<compile_context>
chip_gen: v7x
topology: tpu7x:2x2x1
jax: 0.10.0
libtpu: 0.0.40
codegen_flags: <defaults>
</compile_context>

<pallas_src>
import functools

import jax
import jax.numpy as jnp
from jax.experimental import pallas as pl
from jax.experimental.pallas import tpu as pltpu


NEG_SLOPE = 0.01   # nn.LeakyReLU default
EPS = 1e-5         # nn.InstanceNorm2d default


def convnd_kernel(x_ref, w_ref, g_ref, b_ref, o_ref, p_ref, *, stride, H, W, Ho, Wo):
    """Grid = (N, Cout_blocks); one batch element x one Cout tile per step.

    x_ref : (1, Cin, H, W)      unpadded input for this batch element
    w_ref : (tc, 9*Cin)         conv weight tile, k-index = (kh*3+kw)*Cin + ci
    g_ref : (tc, 1)             instance-norm gamma tile
    b_ref : (tc, 1)             instance-norm beta tile
    o_ref : (1, tc, Ho*Wo)      output tile (lane-dense last dim)
    p_ref : (9*Cin, Ho*Wo)      VMEM scratch: im2col matrix, built once per batch element
    """
    c_idx = pl.program_id(1)

    # Build the im2col matrix only on the first Cout tile of each batch element;
    # it is reused by every subsequent Cout tile (scratch persists across grid steps).
    @pl.when(c_idx == 0)
    def _build_patches():
        x = x_ref[0]                                        # (Cin, H, W)
        cin = x.shape[0]
        # 1-pixel zero halo, built in VMEM (avoids a padded HBM copy in the wrapper).
        zc = jnp.zeros((cin, H, 1), jnp.float32)
        xw = jnp.concatenate([zc, x, zc], axis=2)           # (Cin, H, W+2)
        zr = jnp.zeros((cin, 1, W + 2), jnp.float32)
        xp = jnp.concatenate([zr, xw, zr], axis=1)          # (Cin, H+2, W+2)

        cols = []
        for kh in range(3):
            for kw in range(3):
                patch = jax.lax.slice(
                    xp,
                    (0, kh, kw),
                    (cin, kh + (Ho - 1) * stride + 1, kw + (Wo - 1) * stride + 1),
                    (1, stride, stride),
                )                                           # (Cin, Ho, Wo)
                cols.append(patch.reshape(cin, Ho * Wo))
        p_ref[...] = jnp.concatenate(cols, axis=0)          # (9*Cin, Ho*Wo)

    # One deep MXU matmul: (tc, 9*Cin) @ (9*Cin, Ho*Wo) -> (tc, Ho*Wo), f32 accumulate.
    acc = jnp.dot(w_ref[...], p_ref[...], preferred_element_type=jnp.float32)

    # InstanceNorm2d statistics in a single pass over acc (sum & sum-of-squares over
    # the spatial/lane axis), biased variance — matches PyTorch.
    inv_n = 1.0 / float(Ho * Wo)
    s1 = jnp.sum(acc, axis=1, keepdims=True)                # (tc, 1)
    s2 = jnp.sum(acc * acc, axis=1, keepdims=True)          # (tc, 1)
    mean = s1 * inv_n
    var = s2 * inv_n - mean * mean

    # Fused affine epilogue: y = acc * scale + shift  (2 full-tile VPU passes).
    scale = g_ref[...] * jax.lax.rsqrt(var + EPS)           # (tc, 1)
    shift = b_ref[...] - mean * scale                       # (tc, 1)
    y = acc * scale + shift

    # LeakyReLU
    y = jnp.where(y > 0, y, NEG_SLOPE * y)

    o_ref[0] = y                                            # (tc, Ho*Wo), unmasked stores


def convnd_forward(x_nchw, weight_oihw, bias, gamma, beta, *, stride=1):
    """Equivalent of Convnd.forward for num_dims=2. Input/output are NCHW float32."""
    N, Cin, H, W = x_nchw.shape
    Cout = weight_oihw.shape[0]
    Ho = (H + 2 - 3) // stride + 1
    Wo = (W + 2 - 3) // stride + 1

    x = x_nchw.astype(jnp.float32)

    # OIHW -> (Cout, 9*Cin) with k-index = (kh*3+kw)*Cin + ci (matches in-kernel im2col).
    w2 = jnp.transpose(weight_oihw, (0, 2, 3, 1)).reshape(Cout, 9 * Cin).astype(jnp.float32)
    g2 = gamma.reshape(Cout, 1).astype(jnp.float32)
    b2 = beta.reshape(Cout, 1).astype(jnp.float32)
    # Conv bias is a per-channel constant and is exactly cancelled by the InstanceNorm
    # mean subtraction -> not passed to the kernel (saves one VMEM operand + a VPU pass).
    del bias

    tc = Cout if Cout <= 128 else 128
    assert Cout % tc == 0, "Cout must be divisible by the Cout tile size"
    grid = (N, Cout // tc)

    out = pl.pallas_call(
        functools.partial(convnd_kernel, stride=stride, H=H, W=W, Ho=Ho, Wo=Wo),
        out_shape=jax.ShapeDtypeStruct((N, Cout, Ho * Wo), jnp.float32),
        grid=grid,
        in_specs=[
            pl.BlockSpec((1, Cin, H, W), lambda n, c: (n, 0, 0, 0)),
            pl.BlockSpec((tc, 9 * Cin), lambda n, c: (c, 0)),
            pl.BlockSpec((tc, 1), lambda n, c: (c, 0)),
            pl.BlockSpec((tc, 1), lambda n, c: (c, 0)),
        ],
        out_specs=pl.BlockSpec((1, tc, Ho * Wo), lambda n, c: (n, c, 0)),
        scratch_shapes=[pltpu.VMEM((9 * Cin, Ho * Wo), jnp.float32)],
        compiler_params=pltpu.CompilerParams(
            dimension_semantics=("parallel", "arbitrary"),
            vmem_limit_bytes=64 * 1024 * 1024,
        ),
    )(x, w2, g2, b2)

    return out.reshape(N, Cout, Ho, Wo)


def _reference(x_nchw, weight_oihw, bias, gamma, beta, *, stride=1):
    """Pure-JAX reference mirroring the PyTorch module."""
    y = jax.lax.conv_general_dilated(
        x_nchw, weight_oihw,
        window_strides=(stride, stride),
        padding=((1, 1), (1, 1)),
        dimension_numbers=("NCHW", "OIHW", "NCHW"),
    ) + bias[None, :, None, None]
    mean = jnp.mean(y, axis=(2, 3), keepdims=True)
    var = jnp.mean((y - mean) ** 2, axis=(2, 3), keepdims=True)
    y = (y - mean) * jax.lax.rsqrt(var + EPS)
    y = y * gamma[None, :, None, None] + beta[None, :, None, None]
    return jnp.where(y > 0, y, NEG_SLOPE * y)


if __name__ == "__main__":
    key = jax.random.PRNGKey(0)
    k_x, k_w, k_b, k_g, k_be = jax.random.split(key, 5)

    N, Cin, H, W = 2, 4, 16, 16
    Cout = 8
    stride = 1

    x = jax.random.normal(k_x, (N, Cin, H, W), dtype=jnp.float32)
    # Shapes match nn.Conv2d(Cin, Cout, 3, stride, 1) and nn.InstanceNorm2d(Cout, affine=True).
    weight = 0.1 * jax.random.normal(k_w, (Cout, Cin, 3, 3), dtype=jnp.float32)
    bias = 0.1 * jax.random.normal(k_b, (Cout,), dtype=jnp.float32)
    gamma = 1.0 + 0.1 * jax.random.normal(k_g, (Cout,), dtype=jnp.float32)
    beta = 0.1 * jax.random.normal(k_be, (Cout,), dtype=jnp.float32)

    out = convnd_forward(x, weight, bias, gamma, beta, stride=stride)
    out = jax.block_until_ready(out)

    ref = jax.block_until_ready(_reference(x, weight, bias, gamma, beta, stride=stride))
    assert out.shape == ref.shape == (N, Cout, H, W), (out.shape, ref.shape)
    assert jnp.allclose(out, ref, atol=1e-2, rtol=1e-2), float(jnp.max(jnp.abs(out - ref)))

    print("KERNEL_OK")
</pallas_src>

<mosaic_0001>
module attributes {stable_mosaic.version = 11 : i64} {
  func.func @convnd_kernel(%arg0: i32, %arg1: i32, %arg2: memref<1x4x16x16xf32, #tpu.memory_space<vmem>>, %arg3: memref<8x36xf32, #tpu.memory_space<vmem>>, %arg4: memref<8x1xf32, #tpu.memory_space<vmem>>, %arg5: memref<8x1xf32, #tpu.memory_space<vmem>>, %arg6: memref<1x8x256xf32, #tpu.memory_space<vmem>>, %arg7: memref<36x256xf32, #tpu.memory_space<vmem>>) attributes {dimension_semantics = [#tpu.dimension_semantics<parallel>, #tpu.dimension_semantics<arbitrary>], iteration_bounds = array<i64: 2, 1>, scalar_prefetch = 0 : i64, scratch_operands = 1 : i64, tpu.core_type = #tpu.core_type<tc>, window_params = [{transform_indices = @transform_0, window_bounds = array<i64: 1, 4, 16, 16>}, {transform_indices = @transform_1, window_bounds = array<i64: 8, 36>}, {transform_indices = @transform_2, window_bounds = array<i64: 8, 1>}, {transform_indices = @transform_3, window_bounds = array<i64: 8, 1>}, {transform_indices = @transform_4, window_bounds = array<i64: 1, 8, 256>}]} {
    %c0_i32 = arith.constant 0 : i32
    %0 = arith.cmpi eq, %arg1, %c0_i32 : i32
    %1 = arith.extui %0 : i1 to i32
    %c0_i32_0 = arith.constant 0 : i32
    %2 = arith.cmpi ne, %1, %c0_i32_0 : i32
    scf.if %2 {
      %c0_18 = arith.constant 0 : index
      %c0_19 = arith.constant 0 : index
      %c0_20 = arith.constant 0 : index
      %c0_21 = arith.constant 0 : index
      %37 = vector.load %arg2[%c0_18, %c0_19, %c0_20, %c0_21] : memref<1x4x16x16xf32, #tpu.memory_space<vmem>>, vector<1x4x16x16xf32>
      %38 = vector.shape_cast %37 : vector<1x4x16x16xf32> to vector<4x16x16xf32>
      %cst_22 = arith.constant 0.000000e+00 : f32
      %39 = vector.broadcast %cst_22 : f32 to vector<4x16x1xf32>
      %40 = tpu.concatenate %39, %38, %39 in 2 : vector<4x16x1xf32>, vector<4x16x16xf32>, vector<4x16x1xf32> -> vector<4x16x18xf32>
      %cst_23 = arith.constant 0.000000e+00 : f32
      %41 = vector.broadcast %cst_23 : f32 to vector<4x1x18xf32>
      %42 = tpu.concatenate %41, %40, %41 in 1 : vector<4x1x18xf32>, vector<4x16x18xf32>, vector<4x1x18xf32> -> vector<4x18x18xf32>
      %43 = vector.extract_strided_slice %42 {offsets = [0, 0, 0], sizes = [4, 16, 16], strides = [1, 1, 1]} : vector<4x18x18xf32> to vector<4x16x16xf32>
      %44 = vector.shape_cast %43 : vector<4x16x16xf32> to vector<4x256xf32>
      %45 = vector.extract_strided_slice %42 {offsets = [0, 0, 1], sizes = [4, 16, 16], strides = [1, 1, 1]} : vector<4x18x18xf32> to vector<4x16x16xf32>
      %46 = vector.shape_cast %45 : vector<4x16x16xf32> to vector<4x256xf32>
      %47 = vector.extract_strided_slice %42 {offsets = [0, 0, 2], sizes = [4, 16, 16], strides = [1, 1, 1]} : vector<4x18x18xf32> to vector<4x16x16xf32>
      %48 = vector.shape_cast %47 : vector<4x16x16xf32> to vector<4x256xf32>
      %49 = vector.extract_strided_slice %42 {offsets = [0, 1, 0], sizes = [4, 16, 16], strides = [1, 1, 1]} : vector<4x18x18xf32> to vector<4x16x16xf32>
      %50 = vector.shape_cast %49 : vector<4x16x16xf32> to vector<4x256xf32>
      %51 = vector.extract_strided_slice %42 {offsets = [0, 1, 1], sizes = [4, 16, 16], strides = [1, 1, 1]} : vector<4x18x18xf32> to vector<4x16x16xf32>
      %52 = vector.shape_cast %51 : vector<4x16x16xf32> to vector<4x256xf32>
      %53 = vector.extract_strided_slice %42 {offsets = [0, 1, 2], sizes = [4, 16, 16], strides = [1, 1, 1]} : vector<4x18x18xf32> to vector<4x16x16xf32>
      %54 = vector.shape_cast %53 : vector<4x16x16xf32> to vector<4x256xf32>
      %55 = vector.extract_strided_slice %42 {offsets = [0, 2, 0], sizes = [4, 16, 16], strides = [1, 1, 1]} : vector<4x18x18xf32> to vector<4x16x16xf32>
      %56 = vector.shape_cast %55 : vector<4x16x16xf32> to vector<4x256xf32>
      %57 = vector.extract_strided_slice %42 {offsets = [0, 2, 1], sizes = [4, 16, 16], strides = [1, 1, 1]} : vector<4x18x18xf32> to vector<4x16x16xf32>
      %58 = vector.shape_cast %57 : vector<4x16x16xf32> to vector<4x256xf32>
      %59 = vector.extract_strided_slice %42 {offsets = [0, 2, 2], sizes = [4, 16, 16], strides = [1, 1, 1]} : vector<4x18x18xf32> to vector<4x16x16xf32>
      %60 = vector.shape_cast %59 : vector<4x16x16xf32> to vector<4x256xf32>
      %61 = tpu.concatenate %44, %46, %48, %50, %52, %54, %56, %58, %60 in 0 : vector<4x256xf32>, vector<4x256xf32>, vector<4x256xf32>, vector<4x256xf32>, vector<4x256xf32>, vector<4x256xf32>, vector<4x256xf32>, vector<4x256xf32>, vector<4x256xf32> -> vector<36x256xf32>
      %c0_24 = arith.constant 0 : index
      %c0_25 = arith.constant 0 : index
      %62 = vector.load %arg7[%c0_24, %c0_25] : memref<36x256xf32, #tpu.memory_space<vmem>>, vector<36x256xf32>
      tpu.vector_store %arg7[%c0_24, %c0_25], %61 {strides = array<i32>} : memref<36x256xf32, #tpu.memory_space<vmem>>, vector<36x256xf32>,
    } else {
    }
    %c0 = arith.constant 0 : index
    %c0_1 = arith.constant 0 : index
    %3 = vector.load %arg3[%c0, %c0_1] : memref<8x36xf32, #tpu.memory_space<vmem>>, vector<8x36xf32>
    %c0_2 = arith.constant 0 : index
    %c0_3 = arith.constant 0 : index
    %4 = vector.load %arg7[%c0_2, %c0_3] : memref<36x256xf32, #tpu.memory_space<vmem>>, vector<36x256xf32>
    %cst = arith.constant dense<0.000000e+00> : vector<8x256xf32>
    %5 = tpu.matmul %3, %4, %cst {dimension_numbers = #tpu.dot_dimension_numbers<[1], [0], [0], [1], [0, 0, 1, 1], [], []>} : vector<8x36xf32>, vector<36x256xf32>, vector<8x256xf32> -> vector<8x256xf32>
    %cst_4 = arith.constant dense<0.000000e+00> : vector<8xf32>
    %6 = vector.multi_reduction <add>, %5, %cst_4 [1] : vector<8x256xf32> to vector<8xf32>
    %7 = vector.shape_cast %6 : vector<8xf32> to vector<8x1xf32>
    %8 = arith.mulf %5, %5 : vector<8x256xf32>
    %cst_5 = arith.constant dense<0.000000e+00> : vector<8xf32>
    %9 = vector.multi_reduction <add>, %8, %cst_5 [1] : vector<8x256xf32> to vector<8xf32>
    %10 = vector.shape_cast %9 : vector<8xf32> to vector<8x1xf32>
    %cst_6 = arith.constant 3.906250e-03 : f32
    %11 = vector.broadcast %cst_6 : f32 to vector<8x1xf32>
    %12 = arith.mulf %7, %11 : vector<8x1xf32>
    %cst_7 = arith.constant 3.906250e-03 : f32
    %13 = vector.broadcast %cst_7 : f32 to vector<8x1xf32>
    %14 = arith.mulf %10, %13 : vector<8x1xf32>
    %15 = arith.mulf %12, %12 : vector<8x1xf32>
    %16 = arith.subf %14, %15 : vector<8x1xf32>
    %c0_8 = arith.constant 0 : index
    %c0_9 = arith.constant 0 : index
    %17 = vector.load %arg4[%c0_8, %c0_9] : memref<8x1xf32, #tpu.memory_space<vmem>>, vector<8x1xf32>
    %cst_10 = arith.constant 9.99999974E-6 : f32
    %18 = vector.broadcast %cst_10 : f32 to vector<8x1xf32>
    %19 = arith.addf %16, %18 : vector<8x1xf32>
    %20 = math.rsqrt %19 : vector<8x1xf32>
    %21 = arith.mulf %17, %20 : vector<8x1xf32>
    %c0_11 = arith.constant 0 : index
    %c0_12 = arith.constant 0 : index
    %22 = vector.load %arg5[%c0_11, %c0_12] : memref<8x1xf32, #tpu.memory_space<vmem>>, vector<8x1xf32>
    %23 = arith.mulf %12, %21 : vector<8x1xf32>
    %24 = arith.subf %22, %23 : vector<8x1xf32>
    %25 = vector.broadcast %21 : vector<8x1xf32> to vector<8x256xf32>
    %26 = arith.mulf %5, %25 : vector<8x256xf32>
    %27 = vector.broadcast %24 : vector<8x1xf32> to vector<8x256xf32>
    %28 = arith.addf %26, %27 : vector<8x256xf32>
    %cst_13 = arith.constant 0.000000e+00 : f32
    %29 = vector.broadcast %cst_13 : f32 to vector<8x256xf32>
    %30 = arith.cmpf ogt, %28, %29 : vector<8x256xf32>
    %cst_14 = arith.constant 0.00999999977 : f32
    %31 = vector.broadcast %cst_14 : f32 to vector<8x256xf32>
    %32 = arith.mulf %31, %28 : vector<8x256xf32>
    %33 = arith.select %30, %28, %32 : vector<8x256xi1>, vector<8x256xf32>
    %c0_15 = arith.constant 0 : index
    %c0_16 = arith.constant 0 : index
    %c0_17 = arith.constant 0 : index
    %34 = vector.load %arg6[%c0_15, %c0_16, %c0_17] : memref<1x8x256xf32, #tpu.memory_space<vmem>>, vector<1x8x256xf32>
    %35 = vector.shape_cast %34 : vector<1x8x256xf32> to vector<8x256xf32>
    %36 = vector.shape_cast %33 : vector<8x256xf32> to vector<1x8x256xf32>
    tpu.vector_store %arg6[%c0_15, %c0_16, %c0_17], %36 {strides = array<i32>} : memref<1x8x256xf32, #tpu.memory_space<vmem>>, vector<1x8x256xf32>,
    return
  }
  func.func @transform_0(%arg0: i32, %arg1: i32) -> (i32, i32, i32, i32) {
    %c0_i32 = arith.constant 0 : i32
    %c0_i32_0 = arith.constant 0 : i32
    %c0_i32_1 = arith.constant 0 : i32
    %c0_i32_2 = arith.constant 0 : i32
    return %arg0, %c0_i32, %c0_i32_0, %c0_i32_1 : i32, i32, i32, i32
  }
  func.func @transform_1(%arg0: i32, %arg1: i32) -> (i32, i32) {
    %c0_i32 = arith.constant 0 : i32
    %c0_i32_0 = arith.constant 0 : i32
    return %arg1, %c0_i32 : i32, i32
  }
  func.func @transform_2(%arg0: i32, %arg1: i32) -> (i32, i32) {
    %c0_i32 = arith.constant 0 : i32
    %c0_i32_0 = arith.constant 0 : i32
    return %arg1, %c0_i32 : i32, i32
  }
  func.func @transform_3(%arg0: i32, %arg1: i32) -> (i32, i32) {
    %c0_i32 = arith.constant 0 : i32
    %c0_i32_0 = arith.constant 0 : i32
    return %arg1, %c0_i32 : i32, i32
  }
  func.func @transform_4(%arg0: i32, %arg1: i32) -> (i32, i32, i32) {
    %c0_i32 = arith.constant 0 : i32
    %c0_i32_0 = arith.constant 0 : i32
    return %arg0, %arg1, %c0_i32 : i32, i32, i32
  }
}

</mosaic_0001>

<bundles_post_ra>
// kernel: tpu_custom_call.1
= control target key start
LH: loop header
LB: loop body
LE: loop exit
PB: predicated region body
PF: predicated region fallthrough
CT: control target
= control target key end

     0   :  { %9 = vsyncpa [#allocation4], 0  ;;  %s4836_s0 = inlined_call_operand.hbm [shape: f32[2,4,16,16], index: 0, kind: input, shape index: {}]   ;;  %s4837_s1 = inlined_call_operand.hbm [shape: f32[8,36], index: 1, kind: input, shape index: {}]   ;;  %s4838_s2 = inlined_call_operand.hbm [shape: f32[8,1], index: 2, kind: input, shape index: {}]   ;;  %s4839_s3 = inlined_call_operand.hbm [shape: f32[8,1], index: 3, kind: input, shape index: {}]   ;;  %s4840_s4 = inlined_call_operand.hbm [shape: f32[2,8,256], index: 4, kind: output, shape index: {}]  }
   0x1   :  { %11 = vsyncpa [#allocation4 + $0x1], 0 }
   0x2   :  { %12 = vsyncpa [#allocation7], 0 }
   0x3   :  { %13 = vsyncpa [#allocation10], 0 }
   0x4   :  { %14 = vsyncpa [#allocation5], 0 }
   0x5   :  { %16 = vsyncpa [#allocation5 + $0x1], 0  ;;  %s3172_s15 = smov 0   ;;  %s3174_s16 = smov 0  }
   0x6   :  { %s3176_s17 = smov 0   ;;  %s3178_s18 = smov 0  }
   0x7   :  { %s3180_s19 = smov 0   ;;  %s3182_s20 = smov 0  }
   0x8 LB: > { %s2773_s21 = sadd.s32 4294967295, %s3124_s20   ;;  %s2774_s22 = sadd.s32 4294967294, %s3124_s20   ;;  %s3124_s20 = sphi %s3182_s20, %s22_s20   ;;  %s3120_s19 = sphi %s3180_s19, %s4954_s19   ;;  %s3116_s18 = sphi %s3178_s18, %s4953_s18   ;;  %s3112_s17 = sphi %s3176_s17, %s4952_s17   ;;  %s3108_s16 = sphi %s3174_s16, %s4951_s16   ;;  %s3104_s15 = sphi %s3172_s15, %s4950_s15  }
   0x9   : > { %p54_p0 = scmp.ne.s32.totalorder %s3108_s16, %s3104_s15  ;;  %p3206_p1 = scmp.eq.s32.totalorder %s2773_s21, 0 }
   0xa   : > { %p3210_p2 = scmp.eq.s32.totalorder %s2773_s21, 1  ;;  %p164_p3 = scmp.eq.s32.totalorder %s2774_s22, 1 }
   0xb   : > { %s4865_s23 = scalar_select %p3206_p1, 1, 0 }
   0xc   : > { %s4866_s24 = scalar_select %p3210_p2, 1, 0 }
   0xd   : > { %p3216_p4 = por %p3206_p1, %p54_p0  ;;  %p2775_p5 = scmp.ge.s32.totalorder %s3124_s20, 1 }
   0xe   : > { %p3221_p6 = por %p164_p3, %p54_p0  ;;  %p171_p7 = scmp.lt.s32.totalorder %s3124_s20, 3 }
   0xf   : > { %s4867_s25 = scalar_select %p3216_p4, 1, 0 }
  0x10   : > { %s4868_s26 = scalar_select %p3221_p6, 1, 0 }
  0x11   : > { %p3226_p8 = pnand %p2775_p5, %p171_p7  ;;  %s3126_s28 = smov [#allocation6]  }
  0x12   : > { %s186_s29 = sshll.u32 %s3126_s28, 4  ;;  %s3127_s30 = smov [#allocation8]   ;;  %s187_s29 = int_to_ptr.vmem [resolvable:$true] %s186_s29 }
  0x13   : > { %s4869_s27 = scalar_select %p3226_p8, 1, 0 }
  0x14   : > { %p2823_p10 = pneg %p3226_p8  ;;  %s199_s5 = sshll.u32 %s3127_s30, 4  ;;  %s3239_s5 = int_to_ptr.vmem [resolvable:$true] %s199_s5 }
  0x15   : > { %s3128_s7 = smov [#allocation9]   ;;  %s2920_s11 = scalar_lea.hbm %s4837_s1, 128 }
  0x16   : > { %p3235_p11 = pnand %p2823_p10, %p3206_p1  ;;  %s212_s8 = sshll.u32 %s3128_s7, 4  ;;  %s3241_s8 = int_to_ptr.vmem [resolvable:$true] %s212_s8 }
  0x17   : > { %p2921_p12 = scmp.ne.s32.totalorder %s4837_s1, %s2920_s11  ;;  %p2927_p5 = scmp.lt.u32.totalorder %s2920_s11, %s4837_s1 }
  0x18   : > { %p3251_p13 = pneg %p3235_p11 }
  0x1a   : > { %p2923_p0 = pnand %p3251_p13, %p2921_p12 }
  0x1c   : > { %p2924_p3 = pneg %p2923_p0 }
  0x1e   : > { %p2929_p7 = pnand %p2927_p5, %p2924_p3 }
  0x20   : > { %2932 = shalt.err (!%p2929_p7)
}
  0x21   : > { %s2933_s28 = scalar_lea.vmem %s187_s29, 128  ;;  %p2941_p1 = scmp.lt.s32.totalorder %s187_s29, %s187_s29 }
  0x22   : > { %p2934_p10 = scmp.ne.s32.totalorder %s187_s29, %s2933_s28  ;;  %p2942_p4 = scmp.lt.s32.totalorder %s2933_s28, %s2933_s28 }
  0x24   : > { %p2936_p9 = pnand %p2934_p10, %p3251_p13  ;;  %p2943_p8 = por %p2942_p4, %p2941_p1 }
  0x26   : > { %p2937_p6 = pneg %p2936_p9 }
  0x28   : > { %p2944_p2 = pnand %p2943_p8, %p2937_p6 }
  0x2a   : > { %2947 = shalt.err (!%p2944_p2)
}
  0x2b   : > { %2826 = dma.hbm_to_vmem [thread:$0]  (!%p3235_p11), %s4837_s1, 128, %s187_s29, [#allocation7]  }
  0x2c   : > { %s2948_s11 = scalar_lea.hbm %s4838_s2, 128 }
  0x2d   : > { %p2949_p9 = scmp.ne.s32.totalorder %s4838_s2, %s2948_s11  ;;  %p2955_p2 = scmp.lt.u32.totalorder %s2948_s11, %s4838_s2 }
  0x2f   : > { %p2951_p12 = pnand %p2949_p9, %p3251_p13 }
  0x31   : > { %p2952_p1 = pneg %p2951_p12 }
  0x33   : > { %p2957_p4 = pnand %p2955_p2, %p2952_p1 }
  0x35   : > { %2960 = shalt.err (!%p2957_p4)
}
  0x36   : > { %s2961_s29 = scalar_lea.vmem %s3239_s5, 128  ;;  %p2969_p3 = scmp.lt.s32.totalorder %s3239_s5, %s3239_s5 }
  0x37   : > { %p2962_p6 = scmp.ne.s32.totalorder %s3239_s5, %s2961_s29  ;;  %p2970_p5 = scmp.lt.s32.totalorder %s2961_s29, %s2961_s29 }
  0x39   : > { %p2964_p8 = pnand %p2962_p6, %p3251_p13  ;;  %p2971_p7 = por %p2970_p5, %p2969_p3 }
  0x3b   : > { %p2965_p0 = pneg %p2964_p8 }
  0x3d   : > { %p2972_p10 = pnand %p2971_p7, %p2965_p0 }
  0x3f   : > { %2975 = shalt.err (!%p2972_p10)
}
  0x40   : > { %2829 = dma.hbm_to_vmem [thread:$0]  (!%p3235_p11), %s4838_s2, 128, %s3239_s5, [#allocation7]  }
  0x41   : > { %s2976_s10 = scalar_lea.hbm %s4839_s3, 128 }
  0x42   : > { %p2977_p9 = scmp.ne.s32.totalorder %s4839_s3, %s2976_s10  ;;  %p2983_p2 = scmp.lt.u32.totalorder %s2976_s10, %s4839_s3 }
  0x44   : > { %p2979_p12 = pnand %p2977_p9, %p3251_p13 }
  0x46   : > { %p2980_p1 = pneg %p2979_p12 }
  0x48   : > { %p2985_p4 = pnand %p2983_p2, %p2980_p1 }
  0x4a   : > { %2988 = shalt.err (!%p2985_p4)
}
  0x4b   : > { %s2989_s5 = scalar_lea.vmem %s3241_s8, 128  ;;  %p2997_p3 = scmp.lt.s32.totalorder %s3241_s8, %s3241_s8 }
  0x4c   : > { %p2990_p6 = scmp.ne.s32.totalorder %s3241_s8, %s2989_s5  ;;  %p2998_p5 = scmp.lt.s32.totalorder %s2989_s5, %s2989_s5 }
  0x4e   : > { %p2992_p8 = pnand %p2990_p6, %p3251_p13  ;;  %p2999_p7 = por %p2998_p5, %p2997_p3 }
  0x50   : > { %p2993_p0 = pneg %p2992_p8 }
  0x52   : > { %p3000_p10 = pnand %p2999_p7, %p2993_p0 }
  0x54   : > { %3003 = shalt.err (!%p3000_p10)
}
  0x55   : > { %2832 = dma.hbm_to_vmem [thread:$0]  (!%p3235_p11), %s4839_s3, 128, %s3241_s8, [#allocation10]  }
  0x56   : > { %s41_s14 = sadd.s32 1, %s3112_s17  ;;  %s34_s28 = sadd.s32 1, %s3120_s19 }
  0x57   : > { %p48_p13 = scmp.ne.s32.totalorder %s3112_s17, %s3108_s16  ;;  %p36_p9 = scmp.ge.s32.totalorder %s34_s28, 2 }
  0x58   : > { %p49_p12 = scmp.eq.s32.totalorder %s3124_s20, 0  ;;  %p4872_p1 = scmp.ne.s32.totalorder %s4866_s24, 0 }
  0x59   : > { %p2844_p4 = scmp.lt.s32.totalorder %s3124_s20, 2  ;;  %s4956_s28 = smov (%p36_p9, %s34_s28), 0 }
  0x5a   : > { %p3320_p2 = por %p4872_p1, %p48_p13  ;;  %p50_p6 = por %p49_p12, %p48_p13 }
  0x5b   : > { %s223_s30 = sand.u32 1, %s3112_s17   ;;  %s38_s7 = ssub.s32 %s3120_s19, %s4956_s28 }
  0x5c   : > { %p39_p8 = scmp.eq.s32.totalorder %s38_s7, 0  ;;  %s2780_s8 = sshll.u32 %s223_s30, 6 }
  0x5d   : > { %s2797_s9 = sshll.u32 %s3120_s19, 10  ;;  %s227_s13 = scalar_lea.vmem [#allocation3], %s2780_s8 }
  0x5e   : > { %s3332_s10 = scalar_select %p39_p8, %s3112_s17, %s41_s14  }
  0x5f   : > { %s3337_s24 = scalar_lea.hbm %s4836_s0, %s2797_s9  ;;  %s234_s21 = sshll.u32 %s227_s13, 4  ;;  %s3339_s21 = int_to_ptr.vmem [resolvable:$true] %s234_s21 }
  0x60   : > { %p3343_p11 = pnand %p2844_p4, %p50_p6  ;;  %s3347_s22 = scalar_lea.sflag [#allocation4], %s223_s30 }
  0x61   : > { %s3004_s29 = scalar_lea.hbm %s3337_s24, 1024  ;;  %s3009_s8 = scalar_lea.hbm %s4836_s0, 2048 }
  0x62   : > { %p3005_p0 = scmp.ne.s32.totalorder %s3337_s24, %s3004_s29  ;;  %p3006_p3 = pneg %p3343_p11 }
  0x63   : > { %p3010_p10 = scmp.lt.u32.totalorder %s3337_s24, %s4836_s0  ;;  %p3011_p13 = scmp.lt.u32.totalorder %s3009_s8, %s3004_s29 }
  0x64   : > { %p3007_p5 = pnand %p3006_p3, %p3005_p0  ;;  %p3013_p12 = scmp.lt.u32.totalorder %s3004_s29, %s3337_s24 }
  0x65   : > { %p3012_p9 = por %p3011_p13, %p3010_p10 }
  0x66   : > { %p3008_p7 = pneg %p3007_p5 }
  0x67   : > { %p3014_p1 = por %p3013_p12, %p3012_p9 }
  0x69   : > { %p3015_p4 = pnand %p3014_p1, %p3008_p7 }
  0x6b   : > { %3018 = shalt.err (!%p3015_p4)
}
  0x6c   : > { %s3019_s30 = scalar_lea.vmem %s3339_s21, 1024  ;;  %s3129_s12 = smov [#allocation3]  }
  0x6d   : > { %p3020_p6 = scmp.ne.s32.totalorder %s3339_s21, %s3019_s30  ;;  %s3024_s13 = sshll.u32 %s3129_s12, 4  ;;  %s3025_s13 = int_to_ptr.vmem [resolvable:$false] %s3024_s13 }
  0x6e   : > { %s3026_s14 = scalar_lea.vmem %s3025_s13, 2048  ;;  %p3027_p5 = scmp.lt.s32.totalorder %s3339_s21, %s3025_s13 }
  0x6f   : > { %p3022_p8 = pnand %p3020_p6, %p3006_p3  ;;  %p3028_p10 = scmp.lt.s32.totalorder %s3026_s14, %s3019_s30 }
  0x71   : > { %p3023_p0 = pneg %p3022_p8  ;;  %p3029_p13 = por %p3028_p10, %p3027_p5 }
  0x73   : > { %p3030_p9 = pnand %p3029_p13, %p3023_p0 }
  0x75   : > { %3033 = shalt.err (!%p3030_p9)
}
  0x76   : > { %s3130_s29 = smov 128   ;;  %s3131_s7 = smov 8  }
  0x77   : > { %2836 = dma.hbm_to_vmem [thread:$0]  (!%p3343_p11), %s3337_s24, 1024, %s3339_s21, %s3347_s22, %s3130_s29, %s3130_s29, %s3131_s7  }
  0x78   : > { %p4875_p3 = scmp.ne.s32.totalorder %s4869_s27, 0 }
  0x7a   : > { %246 = sbr.rel (%p4875_p3) target bundleno = 1265 (0x4f1), region = 36 }
  0x81   : > { %s3378_s8 = sand.u32 1, %s3108_s16   ;;  %p4876_p7 = scmp.ne.s32.totalorder %s4867_s25, 0 }
  0x82   : > { %s2784_s9 = sshll.u32 %s3378_s8, 6  ;;  %s249_s11 = scalar_lea.sflag [#allocation4], %s3378_s8 }
  0x83   : > { %s252_s30 = scalar_lea.vmem [#allocation3], %s2784_s9 }
  0x84   : > { %3087 = dma.done.wait (%p4876_p7), %s249_s11, 1024  }
  0x85   : > { %3089 = vsyncadd (%p4876_p7), %s249_s11, 4294966272  ;;  %p4877_p12 = scmp.ne.s32.totalorder %s4865_s23, 0 }
  0x87   : > { %3091 = dma.done.wait (%p4877_p12), [#allocation7], 256  }
  0x88   : > { %3093 = vsyncadd (%p4877_p12), [#allocation7], 4294967040 }
  0x89   : > { %3095 = dma.done.wait (%p4877_p12), [#allocation10], 128  }
  0x8a   : > { %3097 = vsyncadd (%p4877_p12), [#allocation10], 4294967168  ;;  %v295_v0 = vld [vmem:[%s252_s30 + $0x10] sm:$0xff]  ;;  %v293_v1 = vld [vmem:[%s252_s30] sm:$0xff]  ;;  %s3132_s27 = smov 1   ;;  %v4855_v8 = vmov 0.0   ;;  %v397_v56 = vlaneseq }
  0x8b   : > { %313 = vrot.lane.b32.xlu1 %v295_v0, %s3132_s27  ;;  %309 = vrot.lane.b32.xlu0 %v293_v1, %s3132_s27  ;;  %v296_v2 = vld [vmem:[%s252_s30 + $0x18] sm:$0xff]  ;;  %v294_v3 = vld [vmem:[%s252_s30 + $0x8] sm:$0xff]  ;;  %vm333_vm0 = vcmask 7168   ;;  %vm342_vm1 = vcmask 138240   ;;  %vm359_vm2 = vcmask 1040384   ;;  %s3134_s23 = smov 127  }
  0x8c   : > { %v298_v4 = vld [vmem:[%s252_s30 + $0x28] sm:$0xff]  ;;  %v297_v5 = vld [vmem:[%s252_s30 + $0x20] sm:$0xff]  ;;  %v300_v6 = vld [vmem:[%s252_s30 + $0x38] sm:$0xff]  ;;  %2592 = vmatprep.mubr.f32.mxu0 %v4855_v8  ;;  %vm1073_vm3 = vcmask 1046528   ;;  %v3135_v51 = vmov 1983009808  }
  0x8d   : > { %v299_v7 = vld [vmem:[%s252_s30 + $0x30] sm:$0xff]  ;;  %v395_v52 = vunpack.c.l.s4 %v3135_v51  ;;  %s3136_s25 = smov 126   ;;  %vm1768_vm4 = vcmask 1045504   ;;  %s3138_s24 = smov 32   ;;  %vm584_vm5 = vcmask 130048   ;;  %vm586_vm6 = vcmask 261120  }
  0x8e   : > { %s3139_s21 = smov 16   ;;  %s3140_s5 = smov 64   ;;  %vm588_vm7 = vcmask 392192   ;;  %vm590_vm8 = vcmask 523264   ;;  %vm592_vm9 = vcmask 654336   ;;  %vm594_vm10 = vcmask 785408  }
  0x8f   : > { %315 = vrot.lane.b32.xlu1 %v296_v2, %s3132_s27  ;;  %311 = vrot.lane.b32.xlu0 %v294_v3, %s3132_s27  ;;  %v396_v3 = vunpack.c.0.s8 %v395_v52  ;;  %s3141_s22 = smov 48   ;;  %s3142_s12 = smov 80   ;;  %vm596_vm11 = vcmask 916480   ;;  %vm2487_vm12 = vcmask 1043456   ;;  %vm2517_vm13 = vcmask 293888  }
  0x90   : > { %s3143_s13 = smov 96   ;;  %s3144_s14 = smov 112  }
  0x91   : > { %s2788_s29 = sshll.u32 %s3378_s8, 4  ;;  %s2798_s7 = sshll.u32 %s3116_s18, 8 }
  0x92   : > { %s288_s9 = scalar_lea.vmem [#allocation11], %s2788_s29  ;;  %s2641_s18 = scalar_lea.sflag [#allocation5], %s3378_s8 }
  0x93   : > { %319 = vrot.lane.b32.xlu1 %v298_v4, %s3132_s27  ;;  %317 = vrot.lane.b32.xlu0 %v297_v5, %s3132_s27  ;;  %v3483_v4 = vshrl.u32 %v397_v56, 7  ;;  %s2657_s11 = sshll.u32 %s288_s9, 4  ;;  %s4789_s11 = int_to_ptr.vmem [resolvable:$true] %s2657_s11 }
  0x97   : > { %323 = vrot.lane.b32.xlu1 %v300_v6, %s3132_s27  ;;  %321 = vrot.lane.b32.xlu0 %v299_v7, %s3132_s27 }
  0xfd   : > { %v314_v9 = vpop.permute.xlu1 %313  ;;  %v310_v10 = vpop.permute.xlu0 %309 }
  0xfe   : > { %v336_v11 = vsel %vm333_vm0, 0.0, %v314_v9  ;;  %v334_v12 = vsel %vm333_vm0, 0.0, %v310_v10 }
  0xff   : > { %v3398_v13 = vsel %vm342_vm1, %v336_v11, 0.0  ;;  %v343_v14 = vsel %vm342_vm1, %v334_v12, 0.0  ;;  %v3503_v11 = vsub.s32 %v396_v3, %v3483_v4 }
 0x100   : > { %v363_v21 = vrot.slane %v3398_v13, 7  ;;  %v360_v22 = vrot.slane %v343_v14, 7 }
 0x101   : > { %v316_v15 = vpop.permute.xlu1 %315  ;;  %v312_v16 = vpop.permute.xlu0 %311 }
 0x102   : > { %v337_v17 = vsel %vm333_vm0, 0.0, %v316_v15  ;;  %v335_v18 = vsel %vm333_vm0, 0.0, %v312_v16  ;;  %v3452_v59 = vsel %vm359_vm2, 0.0, %v360_v22  ;;  %v3486_v5 = vsel %vm359_vm2, 0.0, %v363_v21 }
 0x103   : > { %v346_v19 = vsel %vm342_vm1, %v337_v17, 0.0  ;;  %v344_v20 = vsel %vm342_vm1, %v335_v18, 0.0 }
 0x104   : > { %v364_v23 = vrot.slane %v346_v19, 7  ;;  %v361_v24 = vrot.slane %v344_v20, 7 }
 0x105   : > { %v320_v25 = vpop.permute.xlu1 %319  ;;  %v318_v26 = vpop.permute.xlu0 %317 }
 0x106   : > { %v3407_v27 = vsel %vm359_vm2, %v363_v21, %v364_v23  ;;  %v3410_v28 = vsel %vm359_vm2, %v360_v22, %v361_v24  ;;  %v3417_v29 = vsel %vm359_vm2, %v361_v24, 0.0  ;;  %v339_v30 = vsel %vm333_vm0, 0.0, %v320_v25 }
 0x107   : > { %615 = vrot.lane.b32.xlu1 %v3407_v27, %s3134_s23  ;;  %611 = vrot.lane.b32.xlu0 %v3410_v28, %s3134_s23  ;;  %v338_v31 = vsel %vm333_vm0, 0.0, %v318_v26  ;;  %v348_v32 = vsel %vm342_vm1, %v339_v30, 0.0  ;;  %v3426_v40 = vsel %vm359_vm2, %v364_v23, 0.0  ;;  %v1077_v41 = vrot.slane %v3417_v29, 1 }
 0x108   : > { %v347_v33 = vsel %vm342_vm1, %v338_v31, 0.0  ;;  %v367_v36 = vrot.slane %v348_v32, 7  ;;  %v1075_v47 = vrot.slane %v3410_v28, 1  ;;  %v1082_v53 = vrot.slane %v3426_v40, 1 }
 0x109   : > { %v324_v34 = vpop.permute.xlu1 %323  ;;  %v322_v35 = vpop.permute.xlu0 %321  ;;  %v366_v37 = vrot.slane %v347_v33, 7  ;;  %v1080_v55 = vrot.slane %v3407_v27, 1  ;;  %v1775_v18 = vrot.slane %v3407_v27, 2 }
 0x10a   : > { %v341_v38 = vsel %vm333_vm0, 0.0, %v324_v34  ;;  %v340_v39 = vsel %vm333_vm0, 0.0, %v322_v35  ;;  %v3432_v44 = vsel %vm359_vm2, %v367_v36, 0.0  ;;  %v3459_v60 = vsel %vm1073_vm3, %v1075_v47, %v1077_v41 }
 0x10b   : > { %v350_v42 = vsel %vm342_vm1, %v341_v38, 0.0  ;;  %v349_v43 = vsel %vm342_vm1, %v340_v39, 0.0  ;;  %v3435_v45 = vsel %vm359_vm2, %v366_v37, %v367_v36  ;;  %v1087_v48 = vrot.slane %v3432_v44, 1 }
 0x10c   : > { %v370_v46 = vrot.slane %v350_v42, 7  ;;  %v369_v49 = vrot.slane %v349_v43, 7  ;;  %619 = vrot.lane.b32.xlu0 %v3435_v45, %s3134_s23  ;;  %v1085_v50 = vrot.slane %v3435_v45, 1  ;;  %v3476_v1 = vsel %vm1073_vm3, %v1080_v55, %v1082_v53 }
 0x10d   : > { %v3493_v9 = vsel %vm359_vm2, 0.0, %v366_v37  ;;  %v460_v16 = vcombine.low %v3410_v28, %v3435_v45  ;;  %v461_v24 = vcombine.high %v3410_v28, %v3435_v45  ;;  %v1780_v32 = vrot.slane %v3435_v45, 2 }
 0x10e   : > { %v3444_v54 = vsel %vm359_vm2, %v370_v46, 0.0  ;;  %v3449_v58 = vsel %vm359_vm2, %v369_v49, %v370_v46  ;;  %v3464_v61 = vsel %vm1073_vm3, %v1085_v50, %v1087_v48  ;;  %v3498_v10 = vsel %vm359_vm2, 0.0, %v369_v49 }
 0x10f   : > { %v1092_v57 = vrot.slane %v3444_v54, 1  ;;  %623 = vrot.lane.b32.xlu1 %v3449_v58, %s3134_s23  ;;  %v1090_v62 = vrot.slane %v3449_v58, 1  ;;  %v1170_v63 = vcombine.low %v3459_v60, %v3464_v61  ;;  %v1171_v0 = vcombine.high %v3459_v60, %v3464_v61 }
 0x110   : > { %609 = vrot.lane.b32.xlu0 %v3452_v59, %s3134_s23  ;;  %v392_v12 = vcombine.low %v3452_v59, %v3493_v9  ;;  %v408_v13 = vcombine.low %v3486_v5, %v3498_v10  ;;  %v476_v17 = vcombine.low %v3407_v27, %v3449_v58  ;;  %v1785_v19 = vrot.slane %v3449_v58, 2 }
 0x111   : > { %v3481_v2 = vsel %vm1073_vm3, %v1090_v62, %v1092_v57  ;;  %v1784_v20 = vrot.slane %v3498_v10, 2  ;;  %v3531_v22 = vrot.slane %v460_v16, %v3503_v11  ;;  %v477_v25 = vcombine.high %v3407_v27, %v3449_v58 }
 0x112   : > { %v1186_v6 = vcombine.low %v3476_v1, %v3481_v2  ;;  %v1187_v7 = vcombine.high %v3476_v1, %v3481_v2  ;;  %v3514_v14 = vrot.slane %v392_v12, %v3503_v11  ;;  %v3517_v15 = vrot.slane %v408_v13, %v3503_v11 }
 0x113   : > { %613 = vrot.lane.b32.xlu1 %v3486_v5, %s3134_s23  ;;  %v3534_v23 = vrot.slane %v476_v17, %v3503_v11  ;;  %v3545_v30 = vrot.slane %v1170_v63, %v3503_v11  ;;  %v1779_v33 = vrot.slane %v3493_v9, 2  ;;  %v3557_v36 = vrot.slane %v461_v24, %v3503_v11 }
 0x114   : > { %617 = vrot.lane.b32.xlu0 %v3493_v9, %s3134_s23  ;;  %v425_v21 = vcombine.high %v3514_v14, %v3517_v15  ;;  %v424_v26 = vcombine.low %v3514_v14, %v3517_v15  ;;  %v3548_v31 = vrot.slane %v1186_v6, %v3503_v11  ;;  %v3560_v37 = vrot.slane %v477_v25, %v3503_v11 }
 0x115   : > { %v493_v34 = vcombine.high %v3531_v22, %v3534_v23  ;;  %v492_v35 = vcombine.low %v3531_v22, %v3534_v23  ;;  %v1770_v39 = vrot.slane %v3410_v28, 2  ;;  %v1774_v41 = vrot.slane %v3486_v5, 2 }
 0x116   : > { %v1203_v38 = vcombine.high %v3545_v30, %v3548_v31  ;;  %v3571_v42 = vsel %vm1768_vm4, %v1784_v20, %v1785_v19  ;;  %v1769_v43 = vrot.slane %v3452_v59, 2  ;;  %v508_v46 = vcombine.low %v3557_v36, %v3560_v37 }
 0x117   : > { %621 = vrot.lane.b32.xlu1 %v3498_v10, %s3134_s23  ;;  %v3579_v48 = vsel %vm1768_vm4, %v1779_v33, %v1780_v32  ;;  %v3582_v49 = vsel %vm1768_vm4, %v1774_v41, %v1775_v18  ;;  %v3585_v51 = vrot.slane %v1171_v0, %v3503_v11  ;;  %v3588_v52 = vrot.slane %v1187_v7, %v3503_v11 }
 0x118   : > { %841 = vrot.lane.b32.xlu0 %v3410_v28, %s3136_s25  ;;  %v1813_v53 = vcombine.low %v3582_v49, %v3571_v42  ;;  %v1202_v56 = vcombine.low %v3545_v30, %v3548_v31  ;;  %v3597_v57 = vsel %vm1768_vm4, %v1769_v43, %v1770_v39  ;;  %v393_v6 = vcombine.high %v3452_v59, %v3493_v9 }
 0x119   : > { %v1218_v63 = vcombine.low %v3585_v51, %v3588_v52  ;;  %v1797_v0 = vcombine.low %v3597_v57, %v3579_v48  ;;  %v1219_v3 = vcombine.high %v3585_v51, %v3588_v52  ;;  %v409_v7 = vcombine.high %v3486_v5, %v3498_v10 }
 0x11a   : > { %v3612_v12 = vrot.slane %v1813_v53, %v3503_v11  ;;  %v3617_v13 = vrot.slane %v393_v6, %v3503_v11  ;;  %v509_v24 = vcombine.high %v3557_v36, %v3560_v37  ;;  %v1772_v41 = vrot.slane %v3417_v29, 2 }
 0x11b   : > { %845 = vrot.lane.b32.xlu1 %v3407_v27, %s3136_s25  ;;  %v3620_v16 = vrot.slane %v409_v7, %v3503_v11  ;;  %v3625_v17 = vrot.slane %v1797_v0, %v3503_v11  ;;  %v1777_v43 = vrot.slane %v3426_v40, 2  ;;  %v1782_v53 = vrot.slane %v3432_v44, 2 }
 0x11c   : > { %849 = vrot.lane.b32.xlu0 %v3435_v45, %s3136_s25  ;;  %v3643_v0 = vsel %vm1768_vm4, %v1770_v39, %v1772_v41  ;;  %v1787_v29 = vrot.slane %v3444_v54, 2  ;;  %v1074_v40 = vrot.slane %v3452_v59, 1  ;;  %v3137_v27 = vmov 1934713408  }
 0x11d   : > { %v440_v20 = vcombine.low %v3617_v13, %v3620_v16  ;;  %v441_v25 = vcombine.high %v3617_v13, %v3620_v16  ;;  %v3651_v6 = vsel %vm1768_vm4, %v1775_v18, %v1777_v43  ;;  %v3654_v7 = vsel %vm1768_vm4, %v1780_v32, %v1782_v53 }
 0x11e   : > { %v3664_v44 = vsel %vm1768_vm4, %v1785_v19, %v1787_v29  ;;  %v3669_v54 = vsel %vm1073_vm3, %v1074_v40, %v1075_v47  ;;  %v1084_v18 = vrot.slane %v3493_v9, 1  ;;  %v1089_v32 = vrot.slane %v3498_v10, 1 }
 0x11f   : > { %853 = vrot.lane.b32.xlu1 %v3449_v58, %s3136_s25  ;;  %v427_v45 = vunpack.c.l.s4 %v3137_v27 }
 0x120   : > { %839 = vrot.lane.b32.xlu0 %v3452_v59, %s3136_s25  ;;  %v1079_v59 = vrot.slane %v3486_v5, 1  ;;  %v1086_v28 = vsel %vm1073_vm3, %v1084_v18, %v1085_v50  ;;  %v1091_v47 = vsel %vm1073_vm3, %v1089_v32, %v1090_v62 }
 0x121   : > { %v428_v50 = vunpack.c.0.s8 %v427_v45  ;;  %v1103_v15 = vcombine.high %v3669_v54, %v1086_v28 }
 0x122   : > { %v1081_v19 = vsel %vm1073_vm3, %v1079_v59, %v1080_v55 }
 0x123   : > { %843 = vrot.lane.b32.xlu1 %v3486_v5, %s3136_s25  ;;  %v3722_v55 = vsub.s32 %v428_v50, %v3483_v4  ;;  %v1118_v62 = vcombine.low %v1081_v19, %v1091_v47  ;;  %v1102_v4 = vcombine.low %v3669_v54, %v1086_v28 }
 0x124   : > { %847 = vrot.lane.b32.xlu0 %v3493_v9, %s3136_s25  ;;  %v1119_v9 = vcombine.high %v1081_v19, %v1091_v47 }
 0x125   : > { %v439_v58 = vrot.slane %v425_v21, %v3722_v55  ;;  %v516_v5 = vrot.slane %v508_v46, %v3722_v55  ;;  %v1126_v14 = vrot.slane %v1118_v62, %v3503_v11  ;;  %v1110_v21 = vrot.slane %v1102_v4, %v3503_v11 }
 0x126   : > { %v1217_v39 = vrot.slane %v1203_v38, %v3722_v55  ;;  %v1226_v29 = vrot.slane %v1218_v63, %v3722_v55  ;;  %v3790_v38 = vrot.slane %v1202_v56, %v3722_v55 }
 0x127   : > { %851 = vrot.lane.b32.xlu1 %v3498_v10, %s3136_s25  ;;  %v457_v23 = vcombine.high %v439_v58, %v4855_v8  ;;  %v1134_v43 = vcombine.low %v1110_v21, %v1126_v14  ;;  %v526_v51 = vcombine.high %v516_v5, %v4855_v8 }
 0x128   : > { %1540 = vrot.lane.b32.xlu0 %v3459_v60, %s3136_s25  ;;  %4880 = vst [vmem:[#allocation18_spill] sm:$0xff] %v3790_v38  ;;  %v1234_v63 = vcombine.high %v3790_v38, %v4855_v8  ;;  %v1235_v56 = vcombine.high %v1217_v39, %v4855_v8  ;;  %v1236_v27 = vcombine.high %v1226_v29, %v4855_v8 }
 0x12b   : > { %1544 = vrot.lane.b32.xlu1 %v3476_v1, %s3136_s25 }
 0x12c   : > { %1548 = vrot.lane.b32.xlu0 %v3464_v61, %s3136_s25 }
 0x12f   : > { %1552 = vrot.lane.b32.xlu1 %v3481_v2, %s3136_s25 }
 0x130   : > { %2005 = vrot.lane.b32.xlu0 %v3643_v0, %s3134_s23 }
 0x133   : > { %2009 = vrot.lane.b32.xlu1 %v3651_v6, %s3134_s23 }
 0x134   : > { %2013 = vrot.lane.b32.xlu0 %v3654_v7, %s3134_s23 }
 0x137   : > { %2017 = vrot.lane.b32.xlu1 %v3664_v44, %s3134_s23 }
 0x138   : > { %1538 = vrot.lane.b32.xlu0 %v3669_v54, %s3136_s25 }
 0x13b   : > { %1542 = vrot.lane.b32.xlu1 %v1081_v19, %s3136_s25 }
 0x13c   : > { %1546 = vrot.lane.b32.xlu0 %v1086_v28, %s3136_s25 }
 0x13f   : > { %1550 = vrot.lane.b32.xlu1 %v1091_v47, %s3136_s25 }
 0x140   : > { %2003 = vrot.lane.b32.xlu0 %v3597_v57, %s3134_s23 }
 0x143   : > { %2007 = vrot.lane.b32.xlu1 %v3582_v49, %s3134_s23 }
 0x144   : > { %2011 = vrot.lane.b32.xlu0 %v3579_v48, %s3134_s23 }
 0x147   : > { %2015 = vrot.lane.b32.xlu1 %v3571_v42, %s3134_s23 }
 0x148   : > { %1310 = vrot.lane.b32.xlu0 %v3459_v60, %s3134_s23  ;;  %v3736_v60 = vrot.slane %v492_v35, %v3722_v55  ;;  %v1117_v35 = vrot.slane %v1103_v15, %v3503_v11 }
 0x14a   : > { %4878 = vst [vmem:[#allocation16_spill] sm:$0xff] %v3736_v60 }
 0x14b   : > { %1314 = vrot.lane.b32.xlu1 %v3476_v1, %s3134_s23  ;;  %v524_v1 = vcombine.high %v3736_v60, %v4855_v8 }
 0x14c   : > { %1318 = vrot.lane.b32.xlu0 %v3464_v61, %s3134_s23  ;;  %v507_v61 = vrot.slane %v493_v34, %v3722_v55  ;;  %v1133_v34 = vrot.slane %v1119_v9, %v3503_v11  ;;  %v448_v9 = vrot.slane %v440_v20, %v3722_v55  ;;  %v1829_v20 = vcombine.low %v3625_v17, %v3612_v12 }
 0x14e   : > { %v525_v22 = vcombine.high %v507_v61, %v4855_v8  ;;  %v1150_v41 = vcombine.low %v1117_v35, %v1133_v34 }
 0x14f   : > { %1322 = vrot.lane.b32.xlu1 %v3481_v2, %s3134_s23  ;;  %v3751_v2 = vrot.slane %v424_v26, %v3722_v55  ;;  %v1135_v26 = vcombine.high %v1110_v21, %v1126_v14 }
 0x150   : > { %1308 = vrot.lane.b32.xlu0 %v3669_v54, %s3134_s23  ;;  %v1158_v40 = vrot.slane %v1150_v41, %v3722_v55  ;;  %v3794_v54 = vrot.slane %v1134_v43, %v3722_v55 }
 0x151   : > { %4879 = vst [vmem:[#allocation17_spill] sm:$0xff] %v3751_v2  ;;  %v456_v10 = vcombine.high %v3751_v2, %v4855_v8  ;;  %v1149_v46 = vrot.slane %v1135_v26, %v3722_v55 }
 0x152   : > { %4881 = vst [vmem:[#allocation19_spill] sm:$0xff] %v3794_v54  ;;  %v1166_v30 = vcombine.high %v3794_v54, %v4855_v8  ;;  %v1168_v50 = vcombine.high %v1158_v40, %v4855_v8 }
 0x153   : > { %1312 = vrot.lane.b32.xlu1 %v1081_v19, %s3134_s23  ;;  %v1167_v32 = vcombine.high %v1149_v46, %v4855_v8 }
 0x154   : > { %1316 = vrot.lane.b32.xlu0 %v1086_v28, %s3134_s23  ;;  %v1881_v28 = vcombine.low %v3651_v6, %v3664_v44 }
 0x157   : > { %1320 = vrot.lane.b32.xlu1 %v1091_v47, %s3134_s23  ;;  %s4787_s23 = scalar_lea.hbm %s4840_s4, %s2798_s7 }
 0x158   : > { %2235 = vrot.lane.b32.xlu0 %v3643_v0, %s3136_s25 }
 0x15b   : > { %2239 = vrot.lane.b32.xlu1 %v3651_v6, %s3136_s25 }
 0x15c   : > { %2243 = vrot.lane.b32.xlu0 %v3654_v7, %s3136_s25 }
 0x15f   : > { %2247 = vrot.lane.b32.xlu1 %v3664_v44, %s3136_s25 }
 0x160   : > { %2233 = vrot.lane.b32.xlu0 %v3597_v57, %s3136_s25 }
 0x163   : > { %2237 = vrot.lane.b32.xlu1 %v3582_v49, %s3136_s25 }
 0x164   : > { %2241 = vrot.lane.b32.xlu0 %v3579_v48, %s3136_s25 }
 0x167   : > { %2245 = vrot.lane.b32.xlu1 %v3571_v42, %s3136_s25  ;;  %s3034_s25 = scalar_lea.vmem %s4789_s11, 256 }
 0x168   : > { %533 = vrot.lane.b32.xlu0 %v439_v58, %s3138_s24  ;;  %v1865_v58 = vcombine.low %v3643_v0, %v3654_v7  ;;  %p3035_p11 = scmp.ne.s32.totalorder %s4789_s11, %s3034_s25 }
 0x16a   : > { %v1873_v14 = vrot.slane %v1865_v58, %v3503_v11  ;;  %v3891_v58 = vrot.slane %v441_v25, %v3722_v55  ;;  %p3036_p1 = pnand %p3035_p11, %p3320_p2 }
 0x16b   : > { %561 = vrot.lane.b32.xlu1 %v507_v61, %s3138_s24  ;;  %v3829_v61 = vrot.slane %v1881_v28, %v3503_v11  ;;  %v523_v28 = vrot.slane %v509_v24, %v3722_v55 }
 0x16c   : > { %557 = vrot.lane.b32.xlu0 %v524_v1, %s3139_s21  ;;  %v1233_v1 = vrot.slane %v1219_v3, %v3722_v55  ;;  %p3037_p4 = pneg %p3036_p1 }
 0x16d   : > { %v1897_v52 = vcombine.low %v1873_v14, %v3829_v61  ;;  %v1898_v16 = vcombine.high %v1873_v14, %v3829_v61 }
 0x16f   : > { %569 = vrot.lane.b32.xlu1 %v516_v5, %s3140_s5  ;;  %v3861_v26 = vrot.slane %v1897_v52, %v3722_v55 }
 0x170   : > { %529 = vrot.lane.b32.xlu0 %v456_v10, %s3139_s21  ;;  %v1151_v10 = vcombine.high %v1117_v35, %v1133_v34  ;;  %v458_v35 = vcombine.high %v448_v9, %v4855_v8 }
 0x171   : > { %4882 = vst [vmem:[#allocation20_spill] sm:$0xff] %v3861_v26  ;;  %v1929_v43 = vcombine.high %v3861_v26, %v4855_v8 }
 0x172   : > { %v1165_v21 = vrot.slane %v1151_v10, %v3722_v55 }
 0x173   : > { %565 = vrot.lane.b32.xlu1 %v525_v22, %s3141_s22 }
 0x174   : > { %537 = vrot.lane.b32.xlu0 %v457_v23, %s3141_s22  ;;  %v1237_v23 = vcombine.high %v1233_v1, %v4855_v8  ;;  %v1169_v13 = vcombine.high %v1165_v21, %v4855_v8 }
 0x177   : > { %1271 = vrot.lane.b32.xlu1 %v1217_v39, %s3138_s24  ;;  %v3867_v39 = vrot.slane %v1829_v20, %v3722_v55 }
 0x178   : > { %1243 = vrot.lane.b32.xlu0 %v1149_v46, %s3138_s24 }
 0x179   : > { %v3780_v53 = vpop.permute.xlu0 %611  ;;  %v3798_v18 = vpop.permute.xlu1 %615  ;;  %4883 = vst [vmem:[#allocation21_spill] sm:$0xff] %v3867_v39 }
 0x17b   : > { %1279 = vrot.lane.b32.xlu1 %v1226_v29, %s3140_s5 }
 0x17c   : > { %1251 = vrot.lane.b32.xlu0 %v1158_v40, %s3140_s5 }
 0x17e   : > { %v3802_v59 = vpop.permute.xlu0 %619 }
 0x17f   : > { %1267 = vrot.lane.b32.xlu1 %v1234_v63, %s3139_s21  ;;  %v1861_v63 = vcombine.high %v3867_v39, %v4855_v8  ;;  %v701_v20 = vcombine.low %v3780_v53, %v3802_v59 }
 0x180   : > { %1239 = vrot.lane.b32.xlu0 %v1166_v30, %s3139_s21 }
 0x181   : > { %v3808_v31 = vpop.permute.xlu1 %623 }
 0x182   : > { %v3811_v19 = vpop.permute.xlu0 %609  ;;  %v717_v36 = vcombine.low %v3798_v18, %v3808_v31 }
 0x183   : > { %1275 = vrot.lane.b32.xlu1 %v1235_v56, %s3141_s22 }
 0x184   : > { %1247 = vrot.lane.b32.xlu0 %v1167_v32, %s3141_s22  ;;  %v725_v14 = vrot.slane %v717_v36, %v3503_v11 }
 0x185   : > { %v3818_v47 = vpop.permute.xlu1 %613 }
 0x186   : > { %v3821_v45 = vpop.permute.xlu0 %617 }
 0x187   : > { %1283 = vrot.lane.b32.xlu1 %v1236_v27, %s3142_s12  ;;  %v634_v46 = vcombine.high %v3811_v19, %v3821_v45 }
 0x188   : > { %1255 = vrot.lane.b32.xlu0 %v1168_v50, %s3142_s12 }
 0x189   : > { %v3831_v62 = vpop.permute.xlu1 %621  ;;  %v648_v30 = vrot.slane %v634_v46, %v3503_v11 }
 0x18a   : > { %v3837_v4 = vpop.permute.xlu0 %841  ;;  %v650_v5 = vcombine.high %v3818_v47, %v3831_v62 }
 0x18b   : > { %1287 = vrot.lane.b32.xlu1 %v1233_v1, %s3143_s13 }
 0x18c   : > { %541 = vrot.lane.b32.xlu0 %v448_v9, %s3140_s5  ;;  %v664_v29 = vrot.slane %v650_v5, %v3503_v11 }
 0x18d   : > { %v3846_v15 = vpop.permute.xlu1 %845 }
 0x18e   : > { %v3850_v3 = vpop.permute.xlu0 %849  ;;  %v681_v1 = vcombine.low %v648_v30, %v664_v29 }
 0x18f   : > { %573 = vrot.lane.b32.xlu1 %v526_v51, %s3142_s12 }
 0x190   : > { %1259 = vrot.lane.b32.xlu0 %v1165_v21, %s3143_s13  ;;  %v3911_v51 = vrot.slane %v681_v1, %v3722_v55  ;;  %v649_v21 = vcombine.low %v3818_v47, %v3831_v62  ;;  %v932_v47 = vcombine.high %v3837_v4, %v3850_v3 }
 0x191   : > { %v3857_v22 = vpop.permute.xlu1 %853 }
 0x192   : > { %v840_v34 = vpop.permute.xlu0 %839  ;;  %v948_v46 = vcombine.high %v3846_v15, %v3857_v22 }
 0x193   : > { %1291 = vrot.lane.b32.xlu1 %v1237_v23, %s3144_s14 }
 0x194   : > { %545 = vrot.lane.b32.xlu0 %v458_v35, %s3142_s12  ;;  %v3929_v35 = vrot.slane %v1898_v16, %v3722_v55  ;;  %v947_v16 = vcombine.low %v3846_v15, %v3857_v22 }
 0x195   : > { %v844_v41 = vpop.permute.xlu1 %843 }
 0x196   : > { %v848_v40 = vpop.permute.xlu0 %847  ;;  %v955_v15 = vrot.slane %v947_v16, %v3503_v11 }
 0x197   : > { %1962 = vrot.lane.b32.xlu1 %v1929_v43, %s3139_s21  ;;  %v863_v56 = vcombine.low %v840_v34, %v848_v40  ;;  %v864_v23 = vcombine.high %v840_v34, %v848_v40  ;;  %v682_v43 = vcombine.high %v648_v30, %v664_v29  ;;  %v709_v40 = vrot.slane %v701_v20, %v3503_v11 }
 0x198   : > { %1934 = vrot.lane.b32.xlu0 %v1861_v63, %s3139_s21  ;;  %v633_v63 = vcombine.low %v3811_v19, %v3821_v45  ;;  %v657_v29 = vrot.slane %v649_v21, %v3503_v11  ;;  %v527_v19 = vcombine.high %v523_v28, %v4855_v8 }
 0x199   : > { %v852_v32 = vpop.permute.xlu1 %851  ;;  %v3895_v9 = vrot.slane %v863_v56, %v3503_v11  ;;  %v878_v62 = vrot.slane %v864_v23, %v3503_v11  ;;  %v718_v56 = vcombine.high %v3798_v18, %v3808_v31  ;;  %v734_v45 = vcombine.high %v709_v40, %v725_v14 }
 0x19a   : > { %v879_v27 = vcombine.low %v844_v41, %v852_v32  ;;  %v3885_v50 = vpop.permute.xlu0 %1540  ;;  %v880_v24 = vcombine.high %v844_v41, %v852_v32  ;;  %v962_v32 = vrot.slane %v948_v46, %v3503_v11  ;;  %v3956_v1 = vrot.slane %v682_v43, %v3722_v55 }
 0x19b   : > { %577 = vrot.lane.b32.xlu1 %v523_v28, %s3143_s13  ;;  %v641_v18 = vrot.slane %v633_v63, %v3503_v11  ;;  %v946_v31 = vrot.slane %v932_v47, %v3503_v11  ;;  %v732_v28 = vrot.slane %v718_v56, %v3503_v11  ;;  %v931_v46 = vcombine.low %v3837_v4, %v3850_v3 }
 0x19c   : > { %v3898_v10 = vrot.slane %v879_v27, %v3503_v11  ;;  %549 = vrot.lane.b32.xlu0 %v3891_v58, %s3143_s13  ;;  %v894_v34 = vrot.slane %v880_v24, %v3503_v11  ;;  %v733_v47 = vcombine.low %v709_v40, %v725_v14 }
 0x19d   : > { %v3904_v37 = vpop.permute.xlu1 %1544  ;;  %v666_v20 = vcombine.high %v641_v18, %v657_v29  ;;  %v980_v23 = vcombine.high %v946_v31, %v962_v32  ;;  %v939_v4 = vrot.slane %v931_v46, %v3503_v11  ;;  %v665_v16 = vcombine.low %v641_v18, %v657_v29 }
 0x19e   : > { %v3908_v25 = vpop.permute.xlu0 %1548  ;;  %v896_v52 = vcombine.high %v3895_v9, %v3898_v10  ;;  %v911_v36 = vcombine.low %v878_v62, %v894_v34 }
 0x19f   : > { %1263 = vrot.lane.b32.xlu1 %v1169_v13, %s3144_s14  ;;  %v702_v13 = vcombine.high %v3780_v53, %v3802_v59  ;;  %v680_v43 = vrot.slane %v666_v20, %v3722_v55  ;;  %v4017_v18 = vrot.slane %v665_v16, %v3722_v55 }
 0x1a0   : > { %782 = vrot.lane.b32.xlu0 %v3911_v51, %s3140_s5  ;;  %v3921_v61 = vrot.slane %v896_v52, %v3722_v55  ;;  %v748_v52 = vrot.slane %v734_v45, %v3722_v55  ;;  %v3974_v59 = vrot.slane %v911_v36, %v3722_v55  ;;  %v912_v45 = vcombine.high %v878_v62, %v894_v34 }
 0x1a1   : > { %v3926_v5 = vpop.permute.xlu1 %1552  ;;  %v716_v21 = vrot.slane %v702_v13, %v3503_v11  ;;  %v964_v13 = vcombine.high %v939_v4, %v955_v15  ;;  %v4004_v34 = vrot.slane %v733_v47, %v3722_v55  ;;  %v979_v47 = vcombine.low %v946_v31, %v962_v32 }
 0x1a2   : > { %v3934_v41 = vpop.permute.xlu0 %2005  ;;  %v4001_v40 = vrot.slane %v912_v45, %v3722_v55  ;;  %v895_v32 = vcombine.low %v3895_v9, %v3898_v10  ;;  %v766_v31 = vcombine.high %v748_v52, %v4855_v8  ;;  %v928_v2 = vcombine.high %v3921_v61, %v4855_v8 }
 0x1a3   : > { %1966 = vrot.lane.b32.xlu1 %v3929_v35, %s3138_s24  ;;  %v749_v63 = vcombine.low %v716_v21, %v732_v28  ;;  %4884 = vst [vmem:[#allocation22_spill] sm:$0xff] %v4004_v34  ;;  %v978_v20 = vrot.slane %v964_v13, %v3722_v55  ;;  %v765_v29 = vcombine.high %v4004_v34, %v4855_v8 }
 0x1a4   : > { %1004 = vrot.lane.b32.xlu0 %v3921_v61, %s3138_s24  ;;  %v987_v16 = vrot.slane %v979_v47, %v3722_v55  ;;  %v698_v47 = vcombine.high %v680_v43, %v4855_v8 }
 0x1a5   : > { %v3949_v30 = vpop.permute.xlu1 %2009  ;;  %v757_v36 = vrot.slane %v749_v63, %v3722_v55  ;;  %v963_v63 = vcombine.low %v939_v4, %v955_v15 }
 0x1a6   : > { %v3953_v27 = vpop.permute.xlu0 %2013  ;;  %v997_v61 = vcombine.high %v987_v16, %v4855_v8 }
 0x1a7   : > { %581 = vrot.lane.b32.xlu1 %v527_v19, %s3144_s14  ;;  %v3989_v19 = vrot.slane %v980_v23, %v3722_v55  ;;  %v750_v23 = vcombine.high %v716_v21, %v732_v28  ;;  %v697_v28 = vcombine.high %v4017_v18, %v4855_v8  ;;  %v4034_v15 = vrot.slane %v963_v63, %v3722_v55 }
 0x1a8   : > { %790 = vrot.lane.b32.xlu0 %v3956_v1, %s3143_s13  ;;  %v767_v9 = vcombine.high %v757_v36, %v4855_v8 }
 0x1a9   : > { %v3968_v24 = vpop.permute.xlu1 %2017  ;;  %v764_v33 = vrot.slane %v750_v23, %v3722_v55  ;;  %4885 = vst [vmem:[#allocation23_spill] sm:$0xff] %v4034_v15 }
 0x1aa   : > { %v3971_v53 = vpop.permute.xlu0 %1538 }
 0x1ab   : > { %802 = vrot.lane.b32.xlu1 %v748_v52, %s3138_s24 }
 0x1ac   : > { %1012 = vrot.lane.b32.xlu0 %v3974_v59, %s3140_s5 }
 0x1ad   : > { %v3983_v22 = vpop.permute.xlu1 %1542 }
 0x1ae   : > { %v3986_v56 = vpop.permute.xlu0 %1546 }
 0x1af   : > { %774 = vrot.lane.b32.xlu1 %v680_v43, %s3138_s24  ;;  %v996_v43 = vcombine.high %v978_v20, %v4855_v8 }
 0x1b0   : > { %1048 = vrot.lane.b32.xlu0 %v3989_v19, %s3143_s13 }
 0x1b1   : > { %v3995_v3 = vpop.permute.xlu1 %1550 }
 0x1b2   : > { %v3998_v14 = vpop.permute.xlu0 %2003 }
 0x1b3   : > { %810 = vrot.lane.b32.xlu1 %v757_v36, %s3140_s5  ;;  %v1646_v36 = vcombine.low %v3904_v37, %v3926_v5 }
 0x1b4   : > { %1020 = vrot.lane.b32.xlu0 %v4001_v40, %s3143_s13 }
 0x1b5   : > { %v4009_v62 = vpop.permute.xlu1 %2007  ;;  %v1654_v26 = vrot.slane %v1646_v36, %v3503_v11 }
 0x1b6   : > { %v4012_v46 = vpop.permute.xlu0 %2011 }
 0x1b7   : > { %1032 = vrot.lane.b32.xlu1 %v978_v20, %s3138_s24  ;;  %v2027_v20 = vcombine.low %v3998_v14, %v4012_v46 }
 0x1b8   : > { %798 = vrot.lane.b32.xlu0 %v765_v29, %s3139_s21  ;;  %v995_v29 = vcombine.high %v4034_v15, %v4855_v8 }
 0x1b9   : > { %v4021_v45 = vpop.permute.xlu1 %2015  ;;  %v2035_v38 = vrot.slane %v2027_v20, %v3503_v11 }
 0x1ba   : > { %v4024_v13 = vpop.permute.xlu0 %1310 }
 0x1bb   : > { %818 = vrot.lane.b32.xlu1 %v764_v33, %s3143_s13 }
 0x1bc   : > { %770 = vrot.lane.b32.xlu0 %v697_v28, %s3139_s21  ;;  %v4051_v28 = vrot.slane %v895_v32, %v3722_v55 }
 0x1bd   : > { %v4030_v21 = vpop.permute.xlu1 %1314 }
 0x1be   : > { %v4039_v4 = vpop.permute.xlu0 %1318  ;;  %4886 = vst [vmem:[#allocation24_spill] sm:$0xff] %v4051_v28 }
 0x1bf   : > { %1040 = vrot.lane.b32.xlu1 %v987_v16, %s3140_s5  ;;  %v929_v16 = vcombine.high %v3974_v59, %v4855_v8  ;;  %v1400_v59 = vcombine.low %v4024_v13, %v4039_v4 }
 0x1c0   : > { %806 = vrot.lane.b32.xlu0 %v766_v31, %s3141_s22  ;;  %v927_v31 = vcombine.high %v4051_v28, %v4855_v8 }
 0x1c1   : > { %v4043_v23 = vpop.permute.xlu1 %1322 }
 0x1c2   : > { %v4048_v63 = vpop.permute.xlu0 %1308 }
 0x1c3   : > { %1028 = vrot.lane.b32.xlu1 %v995_v29, %s3139_s21  ;;  %v699_v29 = vcombine.high %v3911_v51, %v4855_v8  ;;  %v768_v51 = vcombine.high %v764_v33, %v4855_v8  ;;  %v1562_v33 = vcombine.low %v3971_v53, %v3986_v56 }
 0x1c4   : > { %778 = vrot.lane.b32.xlu0 %v698_v47, %s3141_s22  ;;  %v2043_v47 = vcombine.low %v4009_v62, %v4021_v45 }
 0x1c5   : > { %v4056_v10 = vpop.permute.xlu1 %1312 }
 0x1c6   : > { %v4058_v52 = vpop.permute.xlu0 %1316  ;;  %v2051_v54 = vrot.slane %v2043_v47, %v3503_v11  ;;  %v700_v47 = vcombine.high %v3956_v1, %v4855_v8 }
 0x1c7   : > { %814 = vrot.lane.b32.xlu1 %v767_v9, %s3142_s12  ;;  %v1630_v9 = vcombine.low %v3885_v50, %v3908_v25 }
 0x1c8   : > { %1000 = vrot.lane.b32.xlu0 %v927_v31, %s3139_s21 }
 0x1c9   : > { %v4065_v32 = vpop.permute.xlu1 %1320 }
 0x1ca   : > { %v4073_v39 = vpop.permute.xlu0 %2235 }
 0x1cb   : > { %4887 = vst [vmem:[#allocation25_spill] sm:$0xff] %v4073_v39  ;;  %1036 = vrot.lane.b32.xlu1 %v996_v43, %s3141_s22  ;;  %v1578_v43 = vcombine.low %v3983_v22, %v3995_v3 }
 0x1cc   : > { %786 = vrot.lane.b32.xlu0 %v699_v29, %s3142_s12  ;;  %v1638_v29 = vrot.slane %v1630_v9, %v3503_v11  ;;  %v1570_v9 = vrot.slane %v1562_v33, %v3503_v11 }
 0x1cd   : > { %v4082_v31 = vpop.permute.xlu1 %2239  ;;  %v1586_v60 = vrot.slane %v1578_v43, %v3503_v11  ;;  %v1416_v43 = vcombine.low %v4030_v21, %v4043_v23 }
 0x1ce   : > { %4888 = vst [vmem:[#allocation26_spill] sm:$0xff] %v4082_v31  ;;  %v4090_v15 = vpop.permute.xlu0 %2243  ;;  %v1662_v28 = vcombine.low %v1638_v29, %v1654_v26  ;;  %v1663_v8 = vcombine.high %v1638_v29, %v1654_v26  ;;  %v1408_v29 = vrot.slane %v1400_v59, %v3503_v11  ;;  %v1332_v59 = vcombine.low %v4048_v63, %v4058_v52 }
 0x1cf   : > { %4889 = vst [vmem:[#allocation27_spill] sm:$0xff] %v4090_v15  ;;  %822 = vrot.lane.b32.xlu1 %v768_v51, %s3144_s14  ;;  %v2060_v51 = vcombine.high %v2035_v38, %v2051_v54  ;;  %v1594_v1 = vcombine.low %v1570_v9, %v1586_v60  ;;  %v1424_v34 = vrot.slane %v1416_v43, %v3503_v11 }
 0x1d0   : > { %1008 = vrot.lane.b32.xlu0 %v928_v2, %s3141_s22  ;;  %v2111_v2 = vcombine.low %v3949_v30, %v3968_v24  ;;  %v4123_v33 = vrot.slane %v1662_v28, %v3722_v55  ;;  %v1348_v43 = vcombine.low %v4056_v10, %v4065_v32 }
 0x1d1   : > { %v4098_v36 = vpop.permute.xlu1 %2247 }
 0x1d2   : > { %4890 = vst [vmem:[#allocation28_spill] sm:$0xff] %v4098_v36  ;;  %v4104_v39 = vpop.permute.xlu0 %2233  ;;  %4894 = vst [vmem:[#allocation32_spill] sm:$0xff] %v4123_v33  ;;  %v4145_v36 = vrot.slane %v1594_v1, %v3722_v55 }
 0x1d3   : > { %4891 = vst [vmem:[#allocation29_spill] sm:$0xff] %v4104_v39  ;;  %1044 = vrot.lane.b32.xlu1 %v997_v61, %s3142_s12  ;;  %v4120_v61 = vrot.slane %v2060_v51, %v3722_v55  ;;  %v4133_v39 = vrot.slane %v2111_v2, %v3503_v11  ;;  %v4895_v51 = vmov 0.0   ;;  %v1432_v2 = vcombine.low %v1408_v29, %v1424_v34 }
 0x1d4   : > { %794 = vrot.lane.b32.xlu0 %v700_v47, %s3144_s14  ;;  %v2095_v47 = vcombine.low %v3934_v41, %v3953_v27  ;;  %4897 = vst [vmem:[#allocation34_spill] sm:$0xff] %v4145_v36 }
 0x1d5   : > { %v4113_v20 = vpop.permute.xlu1 %2237 }
 0x1d6   : > { %4892 = vst [vmem:[#allocation30_spill] sm:$0xff] %v4113_v20  ;;  %v4117_v15 = vpop.permute.xlu0 %2241  ;;  %v2059_v20 = vcombine.low %v2035_v38, %v2051_v54  ;;  %v2103_v26 = vrot.slane %v2095_v47, %v3503_v11  ;;  %v1626_v47 = vcombine.high %v4145_v36, %v4895_v51  ;;  %v1356_v36 = vrot.slane %v1348_v43, %v3503_v11 }
 0x1d7   : > { %4893 = vst [vmem:[#allocation31_spill] sm:$0xff] %v4117_v15  ;;  %1016 = vrot.lane.b32.xlu1 %v929_v16, %s3142_s12  ;;  %v998_v15 = vcombine.high %v3989_v19, %v4895_v51  ;;  %v1694_v16 = vcombine.high %v4123_v33, %v4895_v51  ;;  %v1677_v19 = vrot.slane %v1663_v8, %v3722_v55 }
 0x1d8   : > { %2168 = vrot.lane.b32.xlu0 %v4120_v61, %s3138_s24  ;;  %v2128_v38 = vcombine.high %v2103_v26, %v4133_v39  ;;  %v1647_v8 = vcombine.high %v3904_v37, %v3926_v5  ;;  %v2112_v5 = vcombine.high %v3949_v30, %v3968_v24 }
 0x1d9   : > { %v4137_v28 = vpop.permute.xlu1 %2245 }
 0x1da   : > { %v4140_v31 = vpop.permute.xlu0 %533  ;;  %v2142_v33 = vrot.slane %v2128_v38, %v3722_v55  ;;  %v4187_v37 = vrot.slane %v1647_v8, %v3503_v11  ;;  %v4208_v24 = vrot.slane %v2112_v5, %v3503_v11 }
 0x1db   : > { %4896 = vst [vmem:[#allocation33_spill] sm:$0xff] %v4140_v31  ;;  %1052 = vrot.lane.b32.xlu1 %v998_v15, %s3144_s14  ;;  %v4162_v15 = vrot.slane %v2059_v20, %v3722_v55 }
 0x1dc   : > { %1727 = vrot.lane.b32.xlu0 %v1694_v16, %s3139_s21  ;;  %v1595_v16 = vcombine.high %v1570_v9, %v1586_v60  ;;  %v1340_v60 = vrot.slane %v1332_v59, %v3503_v11  ;;  %v1433_v9 = vcombine.high %v1408_v29, %v1424_v34  ;;  %v2096_v59 = vcombine.high %v3934_v41, %v3953_v27 }
 0x1dd   : > { %v4152_v54 = vpop.permute.xlu1 %561  ;;  %v2091_v20 = vcombine.high %v4162_v15, %v4895_v51 }
 0x1de   : > { %4898 = vst [vmem:[#allocation35_spill] sm:$0xff] %v4152_v54  ;;  %v4157_v1 = vpop.permute.xlu0 %557  ;;  %v1364_v43 = vcombine.low %v1340_v60, %v1356_v36  ;;  %v1447_v29 = vrot.slane %v1433_v9, %v3722_v55  ;;  %v4220_v27 = vrot.slane %v2096_v59, %v3503_v11  ;;  %v1579_v59 = vcombine.high %v3983_v22, %v3995_v3 }
 0x1df   : > { %4899 = vst [vmem:[#allocation36_spill] sm:$0xff] %v4157_v1  ;;  %1731 = vrot.lane.b32.xlu1 %v1677_v19, %s3138_s24  ;;  %v4179_v1 = vrot.slane %v1432_v2, %v3722_v55  ;;  %v1609_v2 = vrot.slane %v1595_v16, %v3722_v55  ;;  %v1695_v16 = vcombine.high %v1677_v19, %v4895_v51 }
 0x1e0   : > { %1699 = vrot.lane.b32.xlu0 %v1626_v47, %s3139_s21  ;;  %v1631_v47 = vcombine.high %v3885_v50, %v3908_v25  ;;  %v4217_v41 = vrot.slane %v1364_v43, %v3722_v55  ;;  %v1365_v22 = vcombine.high %v1340_v60, %v1356_v36  ;;  %v2044_v36 = vcombine.high %v4009_v62, %v4021_v45 }
 0x1e1   : > { %v4170_v31 = vpop.permute.xlu1 %569  ;;  %v1464_v50 = vcombine.high %v4179_v1, %v4895_v51 }
 0x1e2   : > { %v4174_v54 = vpop.permute.xlu0 %529  ;;  %v4199_v25 = vrot.slane %v1631_v47, %v3503_v11  ;;  %v2143_v47 = vcombine.low %v4220_v27, %v4208_v24  ;;  %v1396_v43 = vcombine.high %v4217_v41, %v4895_v51 }
 0x1e3   : > { %4900 = vst [vmem:[#allocation37_spill] sm:$0xff] %v4174_v54  ;;  %2196 = vrot.lane.b32.xlu1 %v2142_v33, %s3138_s24 }
 0x1e4   : > { %2164 = vrot.lane.b32.xlu0 %v2091_v20, %s3139_s21  ;;  %v1678_v30 = vcombine.low %v4199_v25, %v4187_v37  ;;  %v2127_v20 = vcombine.low %v2103_v26, %v4133_v39  ;;  %v2151_v39 = vrot.slane %v2143_v47, %v3722_v55  ;;  %v4256_v47 = vrot.slane %v1579_v59, %v3503_v11 }
 0x1e5   : > { %v4191_v38 = vpop.permute.xlu1 %565 }
 0x1e6   : > { %v4194_v54 = vpop.permute.xlu0 %537  ;;  %v1686_v9 = vrot.slane %v1678_v30, %v3722_v55  ;;  %v4240_v26 = vrot.slane %v2127_v20, %v3722_v55 }
 0x1e7   : > { %4901 = vst [vmem:[#allocation38_spill] sm:$0xff] %v4194_v54  ;;  %1703 = vrot.lane.b32.xlu1 %v1609_v2, %s3138_s24 }
 0x1e8   : > { %1497 = vrot.lane.b32.xlu0 %v1464_v50, %s3139_s21  ;;  %v2159_v20 = vcombine.high %v4240_v26, %v4895_v51 }
 0x1e9   : > { %v4210_v34 = vpop.permute.xlu1 %1271 }
 0x1ea   : > { %v4213_v8 = vpop.permute.xlu0 %1243 }
 0x1eb   : > { %1501 = vrot.lane.b32.xlu1 %v1447_v29, %s3138_s24 }
 0x1ec   : > { %1735 = vrot.lane.b32.xlu0 %v1695_v16, %s3141_s22  ;;  %v1627_v16 = vcombine.high %v1609_v2, %v4895_v51  ;;  %v2092_v2 = vcombine.high %v4120_v61, %v4895_v51  ;;  %v1379_v61 = vrot.slane %v1365_v22, %v3722_v55 }
 0x1ed   : > { %v4227_v5 = vpop.permute.xlu1 %1279 }
 0x1ee   : > { %v4230_v19 = vpop.permute.xlu0 %1251 }
 0x1ef   : > { %4902 = vst [vmem:[#allocation39_spill] sm:$0xff] %v4230_v19  ;;  %1739 = vrot.lane.b32.xlu1 %v1686_v9, %s3140_s5  ;;  %v1563_v19 = vcombine.high %v3971_v53, %v3986_v56 }
 0x1f0   : > { %1469 = vrot.lane.b32.xlu0 %v1396_v43, %s3139_s21 }
 0x1f1   : > { %v4236_v50 = vpop.permute.xlu1 %1267  ;;  %v4264_v53 = vrot.slane %v1563_v19, %v3503_v11  ;;  %v2028_v19 = vcombine.high %v3998_v14, %v4012_v46  ;;  %v1696_v46 = vcombine.high %v1686_v9, %v4895_v51  ;;  %v1417_v9 = vcombine.high %v4030_v21, %v4043_v23 }
 0x1f2   : > { %v4244_v30 = vpop.permute.xlu0 %1239  ;;  %v2161_v21 = vcombine.high %v2151_v39, %v4895_v51  ;;  %v459_v23 = vcombine.high %v3891_v58, %v4895_v51 }
 0x1f3   : > { %2204 = vrot.lane.b32.xlu1 %v2151_v39, %s3140_s5  ;;  %v1610_v59 = vcombine.low %v4264_v53, %v4256_v47  ;;  %v4292_v45 = vrot.slane %v2028_v19, %v3503_v11 }
 0x1f4   : > { %1707 = vrot.lane.b32.xlu0 %v1627_v16, %s3141_s22  ;;  %v2160_v16 = vcombine.high %v2142_v33, %v4895_v51  ;;  %v1465_v33 = vcombine.high %v1447_v29, %v4895_v51 }
 0x1f5   : > { %v4251_v43 = vpop.permute.xlu1 %1275  ;;  %v1618_v62 = vrot.slane %v1610_v59, %v3722_v55 }
 0x1f6   : > { %v4258_v3 = vpop.permute.xlu0 %1247 }
 0x1f7   : > { %4903 = vst [vmem:[#allocation40_spill] sm:$0xff] %v4258_v3  ;;  %2192 = vrot.lane.b32.xlu1 %v2159_v20, %s3139_s21  ;;  %v4925_v3 = vld [vmem:[#allocation24_spill] sm:$0xff] }
 0x1f8   : > { %2172 = vrot.lane.b32.xlu0 %v2092_v2, %s3141_s22  ;;  %v4285_v2 = vrot.slane %v2044_v36, %v3503_v11  ;;  %v1930_v36 = vcombine.high %v3929_v35, %v4895_v51 }
 0x1f9   : > { %v4267_v56 = vpop.permute.xlu1 %1283 }
 0x1fa   : > { %v4274_v60 = vpop.permute.xlu0 %1255  ;;  %v2075_v29 = vcombine.low %v4292_v45, %v4285_v2 }
 0x1fb   : > { %4904 = vst [vmem:[#allocation41_spill] sm:$0xff] %v4274_v60  ;;  %2200 = vrot.lane.b32.xlu1 %v2160_v16, %s3141_s22  ;;  %v4907_v16 = vcombine.high %v3625_v17, %v3612_v12  ;;  %v1401_v12 = vcombine.high %v4024_v13, %v4039_v4  ;;  %v4322_v17 = vrot.slane %v1417_v9, %v3503_v11 }
 0x1fc   : > { %1473 = vrot.lane.b32.xlu0 %v1379_v61, %s3138_s24  ;;  %v1882_v13 = vcombine.high %v3651_v6, %v3664_v44  ;;  %v930_v4 = vcombine.high %v4001_v40, %v4895_v51  ;;  %v1866_v9 = vcombine.high %v3643_v0, %v3654_v7  ;;  %v1679_v44 = vcombine.high %v4199_v25, %v4187_v37 }
 0x1fd   : > { %v4281_v20 = vpop.permute.xlu1 %1287  ;;  %v1844_v59 = vrot.slane %v4907_v16, %v3722_v55  ;;  %v1628_v0 = vcombine.high %v1618_v62, %v4895_v51 }
 0x1fe   : > { %v4287_v54 = vpop.permute.xlu0 %541  ;;  %v4352_v6 = vrot.slane %v1882_v13, %v3503_v11  ;;  %v4365_v7 = vrot.slane %v1866_v9, %v3503_v11  ;;  %v1693_v25 = vrot.slane %v1679_v44, %v3722_v55 }
 0x1ff   : > { %4905 = vst [vmem:[#allocation42_spill] sm:$0xff] %v4287_v54  ;;  %1505 = vrot.lane.b32.xlu1 %v1465_v33, %s3141_s22  ;;  %v1862_v13 = vcombine.high %v1844_v59, %v4895_v51  ;;  %v4923_v54 = vld [vmem:[#allocation29_spill] sm:$0xff] }
 0x200   : > { %1711 = vrot.lane.b32.xlu0 %v1618_v62, %s3140_s5 }
 0x201   : > { %v4295_v14 = vpop.permute.xlu1 %573 }
 0x202   : > { %v4300_v22 = vpop.permute.xlu0 %1259 }
 0x203   : > { %4906 = vst [vmem:[#allocation43_spill] sm:$0xff] %v4300_v22  ;;  %1743 = vrot.lane.b32.xlu1 %v1696_v46, %s3142_s12  ;;  %v2083_v22 = vrot.slane %v2075_v29, %v3722_v55  ;;  %v4332_v29 = vrot.slane %v1401_v12, %v3503_v11 }
 0x204   : > { %1938 = vrot.lane.b32.xlu0 %v1844_v59, %s3138_s24 }
 0x205   : > { %v4312_v19 = vpop.permute.xlu1 %1291  ;;  %v1448_v39 = vcombine.low %v4332_v29, %v4322_v17  ;;  %v2093_v44 = vcombine.high %v2083_v22, %v4895_v51 }
 0x206   : > { %v4314_v33 = vpop.permute.xlu0 %545 }
 0x207   : > { %4908 = vst [vmem:[#allocation44_spill] sm:$0xff] %v4314_v33  ;;  %1970 = vrot.lane.b32.xlu1 %v1930_v36, %s3141_s22  ;;  %v1397_v36 = vcombine.high %v1379_v61, %v4895_v51  ;;  %v1456_v12 = vrot.slane %v1448_v39, %v3722_v55  ;;  %v1349_v61 = vcombine.high %v4056_v10, %v4065_v32  ;;  %v4922_v33 = vld [vmem:[#allocation31_spill] sm:$0xff] }
 0x208   : > { %2176 = vrot.lane.b32.xlu0 %v2083_v22, %s3140_s5  ;;  %v1913_v10 = vcombine.low %v4365_v7, %v4352_v6  ;;  %v2257_v60 = vcombine.low %v4923_v54, %v4922_v33 }
 0x209   : > { %v4324_v35 = vpop.permute.xlu1 %1962  ;;  %v4377_v32 = vrot.slane %v1349_v61, %v3503_v11  ;;  %v1798_v61 = vcombine.high %v3597_v57, %v3579_v48 }
 0x20a   : > { %4909 = vst [vmem:[#allocation45_spill] sm:$0xff] %v4324_v35  ;;  %v4329_v46 = vpop.permute.xlu0 %1934  ;;  %v1921_v39 = vrot.slane %v1913_v10, %v3722_v55 }
 0x20b   : > { %4910 = vst [vmem:[#allocation46_spill] sm:$0xff] %v4329_v46  ;;  %2208 = vrot.lane.b32.xlu1 %v2161_v21, %s3142_s12  ;;  %v4416_v48 = vrot.slane %v1798_v61, %v3503_v11  ;;  %v4918_v46 = vld [vmem:[#allocation25_spill] sm:$0xff] }
 0x20c   : > { %553 = vrot.lane.b32.xlu0 %v459_v23, %s3144_s14  ;;  %v1333_v23 = vcombine.high %v4048_v63, %v4058_v52  ;;  %v2144_v52 = vcombine.high %v4220_v27, %v4208_v24  ;;  %v1931_v61 = vcombine.high %v1921_v39, %v4895_v51 }
 0x20d   : > { %v4342_v16 = vpop.permute.xlu1 %577 }
 0x20e   : > { %v4344_v58 = vpop.permute.xlu0 %549  ;;  %v4384_v63 = vrot.slane %v1333_v23, %v3503_v11  ;;  %v2158_v27 = vrot.slane %v2144_v52, %v3722_v55  ;;  %v1466_v23 = vcombine.high %v1456_v12, %v4895_v51  ;;  %v1697_v52 = vcombine.high %v1693_v25, %v4895_v51 }
 0x20f   : > { %4911 = vst [vmem:[#allocation47_spill] sm:$0xff] %v4344_v58  ;;  %1024 = vrot.lane.b32.xlu1 %v930_v4, %s3144_s14 }
 0x210   : > { %1477 = vrot.lane.b32.xlu0 %v1397_v36, %s3141_s22  ;;  %v1814_v36 = vcombine.high %v3582_v49, %v3571_v42  ;;  %v1380_v59 = vcombine.low %v4384_v63, %v4377_v32  ;;  %v1611_v49 = vcombine.high %v4264_v53, %v4256_v47 }
 0x211   : > { %v4356_v40 = vpop.permute.xlu1 %1263 }
 0x212   : > { %4912 = vst [vmem:[#allocation48_spill] sm:$0xff] %v4356_v40  ;;  %v4361_v21 = vpop.permute.xlu0 %782  ;;  %v4407_v42 = vrot.slane %v1814_v36, %v3503_v11  ;;  %v1388_v22 = vrot.slane %v1380_v59, %v3722_v55  ;;  %v2076_v36 = vcombine.high %v4292_v45, %v4285_v2  ;;  %v1449_v2 = vcombine.high %v4332_v29, %v4322_v17 }
 0x213   : > { %1509 = vrot.lane.b32.xlu1 %v1456_v12, %s3140_s5 }
 0x214   : > { %1715 = vrot.lane.b32.xlu0 %v1628_v0, %s3142_s12  ;;  %v1845_v47 = vcombine.low %v4416_v48, %v4407_v42  ;;  %v1463_v17 = vrot.slane %v1449_v2, %v3722_v55  ;;  %v4916_v2 = vld [vmem:[#allocation22_spill] sm:$0xff] }
 0x215   : > { %v4371_v37 = vpop.permute.xlu1 %1966 }
 0x216   : > { %4913 = vst [vmem:[#allocation49_spill] sm:$0xff] %v4371_v37  ;;  %v4379_v62 = vpop.permute.xlu0 %1004  ;;  %v1853_v12 = vrot.slane %v1845_v47, %v3722_v55 }
 0x217   : > { %1747 = vrot.lane.b32.xlu1 %v1693_v25, %s3143_s13  ;;  %v2162_v25 = vcombine.high %v2158_v27, %v4895_v51 }
 0x218   : > { %1942 = vrot.lane.b32.xlu0 %v1862_v13, %s3141_s22  ;;  %v1625_v13 = vrot.slane %v1611_v49, %v3722_v55 }
 0x219   : > { %v4389_v4 = vpop.permute.xlu1 %581 }
 0x21a   : > { %v4396_v9 = vpop.permute.xlu0 %790 }
 0x21b   : > { %1974 = vrot.lane.b32.xlu1 %v1921_v39, %s3140_s5 }
 0x21c   : > { %2180 = vrot.lane.b32.xlu0 %v2093_v44, %s3142_s12 }
 0x21d   : > { %v4403_v24 = vpop.permute.xlu1 %802 }
 0x21e   : > { %v4411_v0 = vpop.permute.xlu0 %1012 }
 0x21f   : > { %2212 = vrot.lane.b32.xlu1 %v2158_v27, %s3143_s13  ;;  %v1629_v27 = vcombine.high %v1625_v13, %v4895_v51 }
 0x220   : > { %1481 = vrot.lane.b32.xlu0 %v1388_v22, %s3140_s5 }
 0x221   : > { %v775_v57 = vpop.permute.xlu1 %774 }
 0x222   : > { %v4420_v10 = vpop.permute.xlu0 %1048 }
 0x223   : > { %1513 = vrot.lane.b32.xlu1 %v1466_v23, %s3142_s12  ;;  %v2090_v23 = vrot.slane %v2076_v36, %v3722_v55 }
 0x224   : > { %1719 = vrot.lane.b32.xlu0 %v1625_v13, %s3143_s13 }
 0x225   : > { %v4427_v53 = vpop.permute.xlu1 %810  ;;  %v2094_v40 = vcombine.high %v2090_v23, %v4895_v51 }
 0x226   : > { %v4432_v59 = vpop.permute.xlu0 %1020 }
 0x227   : > { %1751 = vrot.lane.b32.xlu1 %v1697_v52, %s3144_s14  ;;  %v1398_v52 = vcombine.high %v1388_v22, %v4895_v51  ;;  %v1914_v22 = vcombine.high %v4365_v7, %v4352_v6  ;;  %v4917_v7 = vld [vmem:[#allocation27_spill] sm:$0xff] }
 0x228   : > { %1946 = vrot.lane.b32.xlu0 %v1853_v12, %s3140_s5  ;;  %v2325_v35 = vcombine.low %v4918_v46, %v4917_v7 }
 0x229   : > { %v4437_v44 = vpop.permute.xlu1 %1032  ;;  %v1928_v6 = vrot.slane %v1914_v22, %v3722_v55 }
 0x22a   : > { %v799_v49 = vpop.permute.xlu0 %798 }
 0x22b   : > { %1978 = vrot.lane.b32.xlu1 %v1931_v61, %s3142_s12  ;;  %v832_v13 = vsel %vm584_vm5, %v4916_v2, %v799_v49 }
 0x22c   : > { %2184 = vrot.lane.b32.xlu0 %v2090_v23, %s3143_s13  ;;  %v833_v22 = vsel %vm586_vm6, %v832_v13, %v4403_v24  ;;  %v1467_v23 = vcombine.high %v1463_v17, %v4895_v51  ;;  %v4924_v13 = vld [vmem:[#allocation35_spill] sm:$0xff] }
 0x22d   : > { %v4445_v45 = vpop.permute.xlu1 %818 }
 0x22e   : > { %v771_v47 = vpop.permute.xlu0 %770 }
 0x22f   : > { %v825_v39 = vsel %vm584_vm5, %v4017_v18, %v771_v47  ;;  %2216 = vrot.lane.b32.xlu1 %v2162_v25, %s3144_s14  ;;  %v4914_v18 = vld [vmem:[#allocation28_spill] sm:$0xff]  ;;  %v4915_v25 = vld [vmem:[#allocation26_spill] sm:$0xff] }
 0x230   : > { %1485 = vrot.lane.b32.xlu0 %v1398_v52, %s3142_s12  ;;  %v826_v36 = vsel %vm586_vm6, %v825_v39, %v775_v57  ;;  %v2341_v47 = vcombine.low %v4915_v25, %v4914_v18  ;;  %v1863_v57 = vcombine.high %v1853_v12, %v4895_v51  ;;  %v1381_v39 = vcombine.high %v4384_v63, %v4377_v32  ;;  %v4919_v63 = vld [vmem:[#allocation30_spill] sm:$0xff] }
 0x231   : > { %v4454_v61 = vpop.permute.xlu1 %1040  ;;  %v1846_v12 = vcombine.high %v4416_v48, %v4407_v42  ;;  %v2273_v49 = vcombine.low %v4919_v63, %v4137_v28 }
 0x232   : > { %v807_v29 = vpop.permute.xlu0 %806  ;;  %v4478_v32 = vrot.slane %v2341_v47, %v3503_v11  ;;  %v1395_v58 = vrot.slane %v1381_v39, %v3722_v55  ;;  %v4491_v47 = vrot.slane %v2325_v35, %v3503_v11 }
 0x233   : > { %1517 = vrot.lane.b32.xlu1 %v1463_v17, %s3143_s13  ;;  %v834_v42 = vsel %vm588_vm7, %v833_v22, %v807_v29  ;;  %v1860_v24 = vrot.slane %v1846_v12, %v3722_v55  ;;  %v1932_v29 = vcombine.high %v1928_v6, %v4895_v51  ;;  %v4503_v35 = vrot.slane %v2273_v49, %v3503_v11 }
 0x234   : > { %1723 = vrot.lane.b32.xlu0 %v1629_v27, %s3144_s14  ;;  %v2357_v39 = vcombine.low %v4491_v47, %v4478_v32  ;;  %v4515_v49 = vrot.slane %v2257_v60, %v3503_v11 }
 0x235   : > { %v1029_v52 = vpop.permute.xlu1 %1028 }
 0x236   : > { %v779_v37 = vpop.permute.xlu0 %778 }
 0x237   : > { %v827_v27 = vsel %vm588_vm7, %v826_v36, %v779_v37  ;;  %1950 = vrot.lane.b32.xlu1 %v1863_v57, %s3142_s12  ;;  %v4920_v37 = vld [vmem:[#allocation36_spill] sm:$0xff] }
 0x238   : > { %1982 = vrot.lane.b32.xlu0 %v1928_v6, %s3143_s13  ;;  %v4921_v36 = vld [vmem:[#allocation16_spill] sm:$0xff]  ;;  %v828_v6 = vsel %vm590_vm8, %v827_v27, %v4361_v21  ;;  %v1399_v21 = vcombine.high %v1395_v58, %v4895_v51 }
 0x239   : > { %v815_v2 = vpop.permute.xlu1 %814  ;;  %v598_v57 = vsel %vm584_vm5, %v4921_v36, %v4920_v37 }
 0x23a   : > { %v1001_v48 = vpop.permute.xlu0 %1000  ;;  %v599_v22 = vsel %vm586_vm6, %v598_v57, %v4924_v13 }
 0x23b   : > { %2188 = vrot.lane.b32.xlu1 %v2094_v40, %s3144_s14  ;;  %v835_v40 = vsel %vm590_vm8, %v834_v42, %v4427_v53  ;;  %v600_v37 = vsel %vm588_vm7, %v599_v22, %v4191_v38  ;;  %v1055_v57 = vsel %vm584_vm5, %v4925_v3, %v1001_v48  ;;  %v4926_v38 = vld [vmem:[#allocation18_spill] sm:$0xff]  ;;  %v2289_v3 = vcombine.low %v4515_v49, %v4503_v35 }
 0x23c   : > { %1489 = vrot.lane.b32.xlu0 %v1395_v58, %s3143_s13  ;;  %v836_v17 = vsel %vm592_vm9, %v835_v40, %v815_v2  ;;  %v1301_v42 = vsel %vm584_vm5, %v4926_v38, %v4236_v50  ;;  %v601_v27 = vsel %vm590_vm8, %v600_v37, %v4170_v31  ;;  %v4537_v50 = vrot.slane %v2357_v39, %v3722_v55 }
 0x23d   : > { %v1037_v12 = vpop.permute.xlu1 %1036  ;;  %v837_v48 = vsel %vm594_vm10, %v836_v17, %v4445_v45  ;;  %v602_v58 = vsel %vm592_vm9, %v601_v27, %v4295_v14  ;;  %v1056_v22 = vsel %vm586_vm6, %v1055_v57, %v4379_v62  ;;  %v1302_v31 = vsel %vm586_vm6, %v1301_v42, %v4210_v34 }
 0x23e   : > { %v787_v36 = vpop.permute.xlu0 %786  ;;  %v603_v45 = vsel %vm594_vm10, %v602_v58, %v4342_v16  ;;  %v2342_v14 = vcombine.high %v4915_v25, %v4914_v18  ;;  %v4566_v18 = vrot.slane %v2289_v3, %v3722_v55 }
 0x23f   : > { %v829_v53 = vsel %vm592_vm9, %v828_v6, %v787_v36  ;;  %1521 = vrot.lane.b32.xlu1 %v1467_v23, %s3144_s14  ;;  %v4927_v23 = vld [vmem:[#allocation23_spill] sm:$0xff]  ;;  %v604_v62 = vsel %vm596_vm11, %v603_v45, %v4389_v4  ;;  %v1864_v6 = vcombine.high %v1860_v24, %v4895_v51 }
 0x240   : > { %1954 = vrot.lane.b32.xlu0 %v1860_v24, %s3143_s13  ;;  %v4528_v60 = vsel %vm594_vm10, %v829_v53, %v4396_v9  ;;  %v1062_v9 = vsel %vm584_vm5, %v4927_v23, %v1029_v52  ;;  %v1303_v52 = vsel %vm588_vm7, %v1302_v31, %v4251_v43  ;;  %v2358_v43 = vcombine.high %v4491_v47, %v4478_v32 }
 0x241   : > { %v823_v2 = vpop.permute.xlu1 %822  ;;  %v1063_v16 = vsel %vm586_vm6, %v1062_v9, %v4437_v44  ;;  %v1304_v44 = vsel %vm590_vm8, %v1303_v52, %v4227_v5  ;;  %v2326_v24 = vcombine.high %v4918_v46, %v4917_v7  ;;  %v2356_v36 = vrot.slane %v2342_v14, %v3503_v11  ;;  %v4928_v9 = vld [vmem:[#allocation32_spill] sm:$0xff] }
 0x242   : > { %v838_v13 = vsel %vm596_vm11, %v837_v48, %v823_v2  ;;  %v1009_v40 = vpop.permute.xlu0 %1008  ;;  %v1064_v4 = vsel %vm588_vm7, %v1063_v16, %v1037_v12  ;;  %v2274_v32 = vcombine.high %v4919_v63, %v4137_v28  ;;  %v1305_v47 = vsel %vm592_vm9, %v1304_v44, %v4267_v56 }
 0x243   : > { %v2466_v39 = vrot.slane %v838_v13, 4  ;;  %v1057_v37 = vsel %vm588_vm7, %v1056_v22, %v1009_v40  ;;  %1986 = vrot.lane.b32.xlu1 %v1932_v29, %s3144_s14  ;;  %v2290_v12 = vcombine.high %v4515_v49, %v4503_v35  ;;  %v1306_v5 = vsel %vm594_vm10, %v1305_v47, %v4281_v20 }
 0x244   : > { %1493 = vrot.lane.b32.xlu0 %v1399_v21, %s3144_s14  ;;  %v1058_v34 = vsel %vm590_vm8, %v1057_v37, %v4411_v0  ;;  %v2389_v0 = vcombine.high %v4537_v50, %v4895_v51  ;;  %v1065_v57 = vsel %vm590_vm8, %v1064_v4, %v4454_v61  ;;  %v2321_v7 = vcombine.high %v4566_v18, %v4895_v51 }
 0x245   : > { %v2489_v17 = vsel %vm2487_vm12, %v604_v62, %v2466_v39  ;;  %v1045_v29 = vpop.permute.xlu1 %1044  ;;  %v1307_v28 = vsel %vm596_vm11, %v1306_v5, %v4312_v19  ;;  %v2372_v35 = vrot.slane %v2358_v43, %v3722_v55  ;;  %v2258_v20 = vcombine.high %v4923_v54, %v4922_v33 }
 0x246   : > { %v4571_v25 = vpop.permute.xlu0 %794  ;;  %v1066_v56 = vsel %vm592_vm9, %v1065_v57, %v1045_v29  ;;  %v2340_v49 = vrot.slane %v2326_v24, %v3503_v11  ;;  %v2288_v19 = vrot.slane %v2274_v32, %v3503_v11  ;;  %v2472_v38 = vrot.slane %v1307_v28, 4 }
 0x247   : > { %1958 = vrot.lane.b32.xlu1 %v1864_v6, %s3144_s14  ;;  %v1067_v21 = vsel %vm594_vm10, %v1066_v56, %v4420_v10  ;;  %v2304_v3 = vrot.slane %v2290_v12, %v3722_v55  ;;  %v2272_v2 = vrot.slane %v2258_v20, %v3503_v11 }
 0x248   : > { %2422 = vrot.lane.b32.xlu0 %v2389_v0, %s3139_s21  ;;  %v2373_v54 = vcombine.low %v2340_v49, %v2356_v36  ;;  %v2374_v37 = vcombine.high %v2340_v49, %v2356_v36 }
 0x249   : > { %v1017_v46 = vpop.permute.xlu1 %1016  ;;  %v2305_v23 = vcombine.low %v2272_v2, %v2288_v19  ;;  %v2322_v22 = vcombine.high %v2304_v3, %v4895_v51  ;;  %v2306_v16 = vcombine.high %v2272_v2, %v2288_v19 }
 0x24a   : > { %v1059_v63 = vsel %vm592_vm9, %v1058_v34, %v1017_v46  ;;  %v2169_v53 = vpop.permute.xlu0 %2168  ;;  %v2381_v45 = vrot.slane %v2373_v54, %v3722_v55  ;;  %v2388_v44 = vrot.slane %v2374_v37, %v3722_v55  ;;  %v831_v37 = vsel %vm596_vm11, %v4528_v60, %v4571_v25 }
 0x24b   : > { %2394 = vrot.lane.b32.xlu1 %v2321_v7, %s3139_s21  ;;  %v4604_v61 = vsel %vm594_vm10, %v1059_v63, %v4432_v59  ;;  %v2390_v59 = vcombine.high %v2372_v35, %v4895_v51  ;;  %v2313_v39 = vrot.slane %v2305_v23, %v3722_v55  ;;  %v2320_v36 = vrot.slane %v2306_v16, %v3722_v55 }
 0x24c   : > { %2426 = vrot.lane.b32.xlu0 %v2372_v35, %s3138_s24  ;;  %v2391_v52 = vcombine.high %v2381_v45, %v4895_v51  ;;  %v2392_v12 = vcombine.high %v2388_v44, %v4895_v51  ;;  %v2465_v60 = vrot.slane %v831_v37, 4 }
 0x24d   : > { %v1053_v42 = vpop.permute.xlu1 %1052  ;;  %v2323_v43 = vcombine.high %v2313_v39, %v4895_v51  ;;  %v2324_v46 = vcombine.high %v2320_v36, %v4895_v51 }
 0x24e   : > { %v1068_v33 = vsel %vm596_vm11, %v1067_v21, %v1053_v42  ;;  %v1728_v27 = vpop.permute.xlu0 %1727 }
 0x24f   : > { %v2491_v48 = vsel %vm2487_vm12, %v1068_v33, %v2472_v38  ;;  %2398 = vrot.lane.b32.xlu1 %v2304_v3, %s3138_s24  ;;  %v1761_v10 = vsel %vm584_vm5, %v4928_v9, %v1728_v27  ;;  %v4930_v33 = vld [vmem:[#allocation19_spill] sm:$0xff]  ;;  %v4933_v9 = vld [vmem:[#allocation40_spill] sm:$0xff]  ;;  %s3146_s24 = smov [#allocation11]  }
 0x250   : > { %2430 = vrot.lane.b32.xlu0 %v2390_v59, %s3141_s22  ;;  %v2799_v58 = vpack.c.bf16 %v2491_v48, %v2489_v17  ;;  %v4929_v17 = vld [vmem:[#allocation34_spill] sm:$0xff]  ;;  %v1294_v27 = vsel %vm584_vm5, %v4930_v33, %v4244_v30  ;;  %v4931_v48 = vld [vmem:[#allocation37_spill] sm:$0xff]  ;;  %s3038_s21 = sshll.u32 %s3146_s24, 4  ;;  %s3039_s21 = int_to_ptr.vmem [resolvable:$false] %s3038_s21 }
 0x251   : > { %v1732_v13 = vpop.permute.xlu1 %1731  ;;  %v1295_v23 = vsel %vm586_vm6, %v1294_v27, %v4213_v8  ;;  %v4937_v8 = vld [vmem:[#allocation41_spill] sm:$0xff]  ;;  %p3041_p6 = scmp.lt.s32.totalorder %s4789_s11, %s3039_s21 }
 0x252   : > { %v1762_v40 = vsel %vm586_vm6, %v1761_v10, %v1732_v13  ;;  %v1700_v31 = vpop.permute.xlu0 %1699  ;;  %2800 = vmatprep.subr.bf16.mxu0 %v2799_v58  ;;  %v4932_v58 = vld [vmem:[#allocation17_spill] sm:$0xff]  ;;  %v1296_v10 = vsel %vm588_vm7, %v1295_v23, %v4933_v9 }
 0x253   : > { %2402 = vrot.lane.b32.xlu1 %v2322_v22, %s3141_s22  ;;  %v1754_v29 = vsel %vm584_vm5, %v4929_v17, %v1700_v31  ;;  %v4934_v22 = vld [vmem:[#allocation33_spill] sm:$0xff]  ;;  %v4940_v17 = vld [vmem:[#allocation44_spill] sm:$0xff] }
 0x254   : > { %2434 = vrot.lane.b32.xlu0 %v2381_v45, %s3140_s5  ;;  %v4935_v45 = vld [vmem:[#allocation38_spill] sm:$0xff] }
 0x255   : > { %v2197_v11 = vpop.permute.xlu1 %2196 }
 0x256   : > { %v2165_v14 = vpop.permute.xlu0 %2164 }
 0x257   : > { %v2219_v62 = vsel %vm584_vm5, %v4162_v15, %v2165_v14  ;;  %2406 = vrot.lane.b32.xlu1 %v2313_v39, %s3140_s5  ;;  %s3040_s5 = scalar_lea.vmem %s3039_s21, 512 }
 0x258   : > { %2438 = vrot.lane.b32.xlu0 %v2391_v52, %s3142_s12  ;;  %v2220_v34 = vsel %vm586_vm6, %v2219_v62, %v2169_v53  ;;  %v4938_v52 = vld [vmem:[#allocation42_spill] sm:$0xff]  ;;  %p3042_p8 = scmp.lt.s32.totalorder %s3040_s5, %s3034_s25 }
 0x259   : > { %v1704_v6 = vpop.permute.xlu1 %1703 }
 0x25a   : > { %v1755_v4 = vsel %vm586_vm6, %v1754_v29, %v1704_v6  ;;  %v1498_v0 = vpop.permute.xlu0 %1497  ;;  %p3043_p0 = por %p3042_p8, %p3041_p6 }
 0x25b   : > { %2410 = vrot.lane.b32.xlu1 %v2323_v43, %s3142_s12  ;;  %v1531_v15 = vsel %vm584_vm5, %v4179_v1, %v1498_v0  ;;  %v4941_v43 = vld [vmem:[#allocation47_spill] sm:$0xff]  ;;  %v4942_v0 = vld [vmem:[#allocation48_spill] sm:$0xff] }
 0x25c   : > { %2442 = vrot.lane.b32.xlu0 %v2388_v44, %s3143_s13  ;;  %p3044_p5 = pnand %p3043_p0, %p3037_p4 }
 0x25d   : > { %v1502_v24 = vpop.permute.xlu1 %1501 }
 0x25e   : > { %v4643_v32 = vsel %vm586_vm6, %v1531_v15, %v1502_v24  ;;  %v1736_v47 = vpop.permute.xlu0 %1735 }
 0x25f   : > { %v1763_v5 = vsel %vm588_vm7, %v1762_v40, %v1736_v47  ;;  %2414 = vrot.lane.b32.xlu1 %v2320_v36, %s3143_s13 }
 0x260   : > { %2446 = vrot.lane.b32.xlu0 %v2392_v12, %s3144_s14 }
 0x261   : > { %v1740_v57 = vpop.permute.xlu1 %1739 }
 0x262   : > { %v4651_v1 = vsel %vm590_vm8, %v1763_v5, %v1740_v57  ;;  %v1470_v7 = vpop.permute.xlu0 %1469 }
 0x263   : > { %2418 = vrot.lane.b32.xlu1 %v2324_v46, %s3144_s14  ;;  %v1524_v19 = vsel %vm584_vm5, %v4217_v41, %v1470_v7  ;;  %v585_v41 = vsel %vm584_vm5, %v4932_v58, %v4931_v48 }
 0x264   : > { %v587_v40 = vsel %vm586_vm6, %v585_v41, %v4934_v22 }
 0x265   : > { %v2205_v55 = vpop.permute.xlu1 %2204  ;;  %v589_v30 = vsel %vm588_vm7, %v587_v40, %v4935_v45 }
 0x266   : > { %v1708_v28 = vpop.permute.xlu0 %1707  ;;  %v591_v62 = vsel %vm590_vm8, %v589_v30, %v4938_v52  ;;  %v4943_v30 = vld [vmem:[#allocation45_spill] sm:$0xff]  ;;  %v4945_v52 = vld [vmem:[#allocation46_spill] sm:$0xff] }
 0x267   : > { %v4655_v56 = vsel %vm588_vm7, %v1755_v4, %v1708_v28  ;;  %v593_v29 = vsel %vm592_vm9, %v591_v62, %v4940_v17  ;;  %v4946_v62 = vld [vmem:[#allocation21_spill] sm:$0xff] }
 0x268   : > { %v595_v4 = vsel %vm594_vm10, %v593_v29, %v4941_v43 }
 0x269   : > { %v2193_v63 = vpop.permute.xlu1 %2192 }
 0x26a   : > { %v2226_v53 = vsel %vm584_vm5, %v4240_v26, %v2193_v63  ;;  %v2173_v35 = vpop.permute.xlu0 %2172 }
 0x26b   : > { %v4660_v20 = vsel %vm588_vm7, %v2220_v34, %v2173_v35  ;;  %v2227_v51 = vsel %vm586_vm6, %v2226_v53, %v2197_v11  ;;  %v4936_v11 = vld [vmem:[#allocation39_spill] sm:$0xff] }
 0x26c   : > { %v1297_v39 = vsel %vm590_vm8, %v1296_v10, %v4936_v11  ;;  %v4939_v34 = vld [vmem:[#allocation43_spill] sm:$0xff]  ;;  %v4944_v11 = vld [vmem:[#allocation20_spill] sm:$0xff] }
 0x26d   : > { %v2201_v49 = vpop.permute.xlu1 %2200  ;;  %v1298_v14 = vsel %vm592_vm9, %v1297_v39, %v4937_v8  ;;  %v1996_v39 = vsel %vm584_vm5, %v4944_v11, %v4943_v30 }
 0x26e   : > { %v2228_v38 = vsel %vm588_vm7, %v2227_v51, %v2201_v49  ;;  %v1474_v42 = vpop.permute.xlu0 %1473  ;;  %v1299_v16 = vsel %vm594_vm10, %v1298_v14, %v4939_v34  ;;  %v1989_v34 = vsel %vm584_vm5, %v4946_v62, %v4945_v52 }
 0x26f   : > { %v4667_v21 = vsel %vm586_vm6, %v1524_v19, %v1474_v42  ;;  %v4670_v3 = vsel %vm590_vm8, %v2228_v38, %v2205_v55  ;;  %v1300_v44 = vsel %vm596_vm11, %v1299_v16, %v4942_v0  ;;  %v4947_v16 = vld [vmem:[#allocation49_spill] sm:$0xff] }
 0x270   : > { %v2471_v36 = vrot.slane %v1300_v44, 4 }
 0x271   : > { %v1506_v26 = vpop.permute.xlu1 %1505 }
 0x272   : > { %v1712_v54 = vpop.permute.xlu0 %1711  ;;  %v1533_v37 = vsel %vm588_vm7, %v4643_v32, %v1506_v26 }
 0x275   : > { %v1744_v59 = vpop.permute.xlu1 %1743 }
 0x276   : > { %v1939_v2 = vpop.permute.xlu0 %1938  ;;  %v1765_v22 = vsel %vm592_vm9, %v4651_v1, %v1744_v59  ;;  %v1997_v1 = vsel %vm586_vm6, %v1996_v39, %v4947_v16  ;;  %v1757_v59 = vsel %vm590_vm8, %v4655_v56, %v1712_v54 }
 0x277   : > { %v1990_v29 = vsel %vm586_vm6, %v1989_v34, %v1939_v2 }
 0x279   : > { %v1971_v13 = vpop.permute.xlu1 %1970 }
 0x27a   : > { %v4684_v31 = vpop.permute.xlu0 %2176  ;;  %v1998_v43 = vsel %vm588_vm7, %v1997_v1, %v1971_v13 }
 0x27b   : > { %v2222_v56 = vsel %vm590_vm8, %v4660_v20, %v4684_v31 }
 0x27d   : > { %v2209_v6 = vpop.permute.xlu1 %2208 }
 0x27e   : > { %v554_v25 = vpop.permute.xlu0 %553  ;;  %v2230_v32 = vsel %vm592_vm9, %v4670_v3, %v2209_v6 }
 0x27f   : > { %v597_v15 = vsel %vm596_vm11, %v595_v4, %v554_v25 }
 0x280   : > { %v2488_v24 = vsel %vm2487_vm12, %v597_v15, %v2465_v60 }
 0x281   : > { %v1025_v47 = vpop.permute.xlu1 %1024 }
 0x282   : > { %v1061_v12 = vsel %vm596_vm11, %v4604_v61, %v1025_v47  ;;  %v1478_v5 = vpop.permute.xlu0 %1477 }
 0x283   : > { %v2490_v57 = vsel %vm2487_vm12, %v1061_v12, %v2471_v36  ;;  %v1526_v6 = vsel %vm588_vm7, %v4667_v21, %v1478_v5 }
 0x284   : > { %v2801_v46 = vpack.c.bf16 %v2490_v57, %v2488_v24 }
 0x285   : > { %v1510_v7 = vpop.permute.xlu1 %1509 }
 0x286   : > { %v1716_v55 = vpop.permute.xlu0 %1715  ;;  %2802 = vmatpush1.bf16.msra.mxu0 %v2801_v46  ;;  %v1534_v17 = vsel %vm590_vm8, %v1533_v37, %v1510_v7 }
 0x287   : > { %v1758_v4 = vsel %vm592_vm9, %v1757_v59, %v1716_v55 }
 0x289   : > { %v1748_v28 = vpop.permute.xlu1 %1747 }
 0x28a   : > { %v1943_v63 = vpop.permute.xlu0 %1942  ;;  %v1766_v40 = vsel %vm594_vm10, %v1765_v22, %v1748_v28 }
 0x28b   : > { %v1991_v47 = vsel %vm588_vm7, %v1990_v29, %v1943_v63 }
 0x28d   : > { %v1975_v53 = vpop.permute.xlu1 %1974 }
 0x28e   : > { %v2181_v35 = vpop.permute.xlu0 %2180  ;;  %v1999_v15 = vsel %vm590_vm8, %v1998_v43, %v1975_v53 }
 0x28f   : > { %v2223_v20 = vsel %vm592_vm9, %v2222_v56, %v2181_v35  ;;  %v2506_v56 = vld [vmem:[#allocation6] sm:$0xff] }
 0x291   : > { %v2213_v51 = vpop.permute.xlu1 %2212 }
 0x292   : > { %v1482_v49 = vpop.permute.xlu0 %1481  ;;  %v2231_v0 = vsel %vm594_vm10, %v2230_v32, %v2213_v51 }
 0x293   : > { %v1527_v31 = vsel %vm590_vm8, %v1526_v6, %v1482_v49 }
 0x295   : > { %v1514_v19 = vpop.permute.xlu1 %1513 }
 0x296   : > { %v1720_v38 = vpop.permute.xlu0 %1719  ;;  %v1535_v26 = vsel %vm592_vm9, %v1534_v17, %v1514_v19 }
 0x297   : > { %v1759_v54 = vsel %vm594_vm10, %v1758_v4, %v1720_v38 }
 0x299   : > { %v1752_v42 = vpop.permute.xlu1 %1751 }
 0x29a   : > { %v1947_v33 = vpop.permute.xlu0 %1946  ;;  %v1767_v8 = vsel %vm596_vm11, %v1766_v40, %v1752_v42 }
 0x29b   : > { %v2478_v44 = vrot.slane %v1767_v8, 4  ;;  %v1992_v51 = vsel %vm590_vm8, %v1991_v47, %v1947_v33 }
 0x29d   : > { %v1979_v27 = vpop.permute.xlu1 %1978 }
 0x29e   : > { %v2185_v48 = vpop.permute.xlu0 %2184  ;;  %v2000_v12 = vsel %vm592_vm9, %v1999_v15, %v1979_v27 }
 0x29f   : > { %v2224_v57 = vsel %vm594_vm10, %v2223_v20, %v2185_v48 }
 0x2a1   : > { %v2217_v61 = vpop.permute.xlu1 %2216 }
 0x2a2   : > { %v1486_v58 = vpop.permute.xlu0 %1485  ;;  %v2232_v2 = vsel %vm596_vm11, %v2231_v0, %v2217_v61 }
 0x2a3   : > { %v2484_v46 = vrot.slane %v2232_v2, 4  ;;  %v1528_v7 = vsel %vm592_vm9, %v1527_v31, %v1486_v58 }
 0x2a5   : > { %v1518_v41 = vpop.permute.xlu1 %1517 }
 0x2a6   : > { %v1724_v23 = vpop.permute.xlu0 %1723  ;;  %v1536_v60 = vsel %vm594_vm10, %v1535_v26, %v1518_v41 }
 0x2a7   : > { %v1760_v24 = vsel %vm596_vm11, %v1759_v54, %v1724_v23 }
 0x2a8   : > { %v2477_v55 = vrot.slane %v1760_v24, 4 }
 0x2a9   : > { %v1951_v9 = vpop.permute.xlu1 %1950 }
 0x2aa   : > { %v1983_v10 = vpop.permute.xlu0 %1982  ;;  %v1993_v38 = vsel %vm592_vm9, %v1992_v51, %v1951_v9 }
 0x2ab   : > { %v2001_v21 = vsel %vm594_vm10, %v2000_v12, %v1983_v10 }
 0x2ad   : > { %v2189_v45 = vpop.permute.xlu1 %2188 }
 0x2ae   : > { %v1490_v14 = vpop.permute.xlu0 %1489  ;;  %v2225_v28 = vsel %vm596_vm11, %v2224_v57, %v2189_v45 }
 0x2af   : > { %v1529_v53 = vsel %vm594_vm10, %v1528_v7, %v1490_v14  ;;  %v2483_v48 = vrot.slane %v2225_v28, 4  ;;  %v2615_v28 = vld [vmem:[#allocation9] sm:$0xff] }
 0x2b1   : > { %v1522_v25 = vpop.permute.xlu1 %1521 }
 0x2b2   : > { %v1537_v3 = vsel %vm596_vm11, %v1536_v60, %v1522_v25  ;;  %v1955_v13 = vpop.permute.xlu0 %1954 }
 0x2b3   : > { %v2493_v36 = vsel %vm2487_vm12, %v1537_v3, %v2478_v44  ;;  %v1994_v61 = vsel %vm594_vm10, %v1993_v38, %v1955_v13 }
 0x2b5   : > { %v1987_v5 = vpop.permute.xlu1 %1986 }
 0x2b6   : > { %v2002_v63 = vsel %vm596_vm11, %v2001_v21, %v1987_v5  ;;  %v1494_v35 = vpop.permute.xlu0 %1493  ;;  %v2611_v21 = vld [vmem:[#allocation8] sm:$0xff] }
 0x2b7   : > { %v2495_v49 = vsel %vm2487_vm12, %v2002_v63, %v2484_v46  ;;  %v1530_v19 = vsel %vm596_vm11, %v1529_v53, %v1494_v35 }
 0x2b8   : > { %v2492_v42 = vsel %vm2487_vm12, %v1530_v19, %v2477_v55  ;;  %v2803_v27 = vpack.c.bf16 %v2495_v49, %v2493_v36  ;;  %v3145_v36 = vmov 0  }
 0x2b9   : > { %v1959_v58 = vpop.permute.xlu1 %1958  ;;  %2916 = vset.pattern.permute.xlu0 %v3145_v36  ;;  %2917 = vset.pattern.permute.xlu1 %v3145_v36 }
 0x2ba   : > { %v1995_v41 = vsel %vm596_vm11, %v1994_v61, %v1959_v58  ;;  %v2423_v23 = vpop.permute.xlu0 %2422  ;;  %2804 = vmatprep.subr.bf16.mxu0 %v2803_v27 }
 0x2bb   : > { %v2494_v10 = vsel %vm2487_vm12, %v1995_v41, %v2483_v48  ;;  %v2456_v8 = vsel %vm584_vm5, %v4537_v50, %v2423_v23 }
 0x2bc   : > { %v2805_v33 = vpack.c.bf16 %v2494_v10, %v2492_v42 }
 0x2bd   : > { %v2395_v22 = vpop.permute.xlu1 %2394 }
 0x2be   : > { %v2427_v40 = vpop.permute.xlu0 %2426  ;;  %2806 = vmatpush1.bf16.msra.mxu0 %v2805_v33  ;;  %v2449_v16 = vsel %vm584_vm5, %v4566_v18, %v2395_v22 }
 0x2bf   : > { %v2457_v52 = vsel %vm586_vm6, %v2456_v8, %v2427_v40 }
 0x2c1   : > { %v2399_v45 = vpop.permute.xlu1 %2398 }
 0x2c2   : > { %v2431_v30 = vpop.permute.xlu0 %2430  ;;  %v2450_v59 = vsel %vm586_vm6, %v2449_v16, %v2399_v45 }
 0x2c3   : > { %v2458_v34 = vsel %vm588_vm7, %v2457_v52, %v2431_v30 }
 0x2c5   : > { %v2403_v9 = vpop.permute.xlu1 %2402 }
 0x2c6   : > { %v2435_v11 = vpop.permute.xlu0 %2434  ;;  %v2451_v43 = vsel %vm588_vm7, %v2450_v59, %v2403_v9 }
 0x2c7   : > { %v2459_v1 = vsel %vm590_vm8, %v2458_v34, %v2435_v11 }
 0x2c9   : > { %v2407_v39 = vpop.permute.xlu1 %2406 }
 0x2ca   : > { %v2439_v37 = vpop.permute.xlu0 %2438  ;;  %v2452_v26 = vsel %vm590_vm8, %v2451_v43, %v2407_v39 }
 0x2cb   : > { %v2460_v17 = vsel %vm592_vm9, %v2459_v1, %v2439_v37 }
 0x2cd   : > { %v2411_v14 = vpop.permute.xlu1 %2410 }
 0x2ce   : > { %v2443_v62 = vpop.permute.xlu0 %2442  ;;  %v2453_v0 = vsel %vm592_vm9, %v2452_v26, %v2411_v14 }
 0x2cf   : > { %v2461_v50 = vsel %vm594_vm10, %v2460_v17, %v2443_v62 }
 0x2d1   : > { %v2415_v29 = vpop.permute.xlu1 %2414 }
 0x2d2   : > { %v2447_v32 = vpop.permute.xlu0 %2446  ;;  %v2454_v18 = vsel %vm594_vm10, %v2453_v0, %v2415_v29 }
 0x2d3   : > { %v2462_v4 = vsel %vm596_vm11, %v2461_v50, %v2447_v32 }
 0x2d4   : > { %2505 = vst [vmem:[#allocation2 + $0x48] sm:$0xf] %v2462_v4 }
 0x2d5   : > { %v2419_v44 = vpop.permute.xlu1 %2418 }
 0x2d6   : > { %v2455_v60 = vsel %vm596_vm11, %v2454_v18, %v2419_v44 }
 0x2d7   : > { %2504 = vst [vmem:[#allocation2 + $0x40] sm:$0xf] %v2455_v60 }
 0x2db   : > { %v2516_v25 = vld [vmem:[#allocation2 + $0x48] sm:$0xf] }
 0x2dc   : > { %2789 = vmatprep.subr.msk.mxu0 %vm2487_vm12, %v2516_v25 }
 0x2de   : > { %v2515_v54 = vld [vmem:[#allocation2 + $0x40] sm:$0xf] }
 0x2df   : > { %2790 = vmatpush1.msk.msra.mxu0 %vm2487_vm12, %v2515_v54 }
 0x2e0   : > { %2791 = vmatmul.mubr.msk.f32.vlgmr.msra.gmra.mrb[0].mxu0 %vm2517_vm13, %v2506_v56 }
 0x3b3   : > { %v2594_v2 = vpop.f32.mrb[0].mxu0 }
 0x3b4   : > { %v2602_v3 = vmul.f32 %v2594_v2, %v2594_v2  ;;  %v2596_v13 = vpop.f32.mrb[1].mxu0 }
 0x3b5   : > { %v2599_v6 = vadd.f32 %v2596_v13, %v2594_v2  ;;  %v2603_v15 = vmul.f32 %v2596_v13, %v2596_v13 }
 0x3b7   : > { %v2604_v24 = vadd.f32 %v2603_v15, %v2602_v3  ;;  %2600 = vadd.xlane.f32.xlu0 %v2599_v6 }
 0x3b9   : > { %2605 = vadd.xlane.f32.xlu1 %v2604_v24 }
 0x444   : > { %v2601_v47 = vpop.xlane.xlu0 %2600 }
 0x445   : > { %v2607_v20 = vmul.f32 0.00390625, %v2601_v47 }
 0x446   : > { %v2606_v31 = vpop.xlane.xlu1 %2605 }
 0x447   : > { %v2609_v12 = vmul.f32 %v2607_v20, %v2607_v20  ;;  %v2608_v57 = vmul.f32 0.00390625, %v2606_v31 }
 0x449   : > { %v2610_v46 = vsub.f32 %v2608_v57, %v2609_v12 }
 0x44b   : > { %v2612_v7 = vadd.f32 1e-05, %v2610_v46 }
 0x44d   : > { %2918 = vrsqrt.f32 %v2612_v7 }
 0x457   : > { %v2919_v5 = vpop.eup %2918 }
 0x458   : > { %v2614_v55 = vmul.f32 %v2919_v5, %v2611_v21 }
 0x45a   : > { %2620 = vperm.xlu0 %2916, %v2614_v55   ;;  %v2616_v53 = vmul.f32 %v2614_v55, %v2607_v20 }
 0x45c   : > { %v2617_v63 = vsub.f32 %v2615_v28, %v2616_v53 }
 0x45e   : > { %2627 = vperm.xlu1 %2917, %v2617_v63  }
 0x4d9   : > { %v2621_v35 = vpop.permute.xlu0 %2620 }
 0x4da   : > { %v2623_v51 = vmul.f32 %v2621_v35, %v2594_v2  ;;  %v2624_v49 = vmul.f32 %v2621_v35, %v2596_v13 }
 0x4dd   : > { %v2628_v19 = vpop.permute.xlu1 %2627 }
 0x4de   : > { %v2630_v38 = vadd.f32 %v2628_v19, %v2623_v51  ;;  %v2631_v42 = vadd.f32 %v2628_v19, %v2624_v49 }
 0x4e0   : > { %vm2632_vm14 = vcmp.gt.f32.partialorder %v2630_v38, 0.0  ;;  %vm2633_vm15 = vcmp.gt.f32.partialorder %v2631_v42, 0.0  ;;  %v2634_v27 = vmul.f32 0.01, %v2630_v38  ;;  %v2635_v48 = vmul.f32 0.01, %v2631_v42 }
 0x4e2   : > { %v2636_v61 = vsel %vm2632_vm14, %v2630_v38, %v2634_v27  ;;  %v2637_v58 = vsel %vm2633_vm15, %v2631_v42, %v2635_v48 }
 0x4e3   : > { %2638 = vst [vmem:[%s288_s9] sm:$0xff] %v2636_v61  ;;  %2639 = vst [vmem:[%s288_s9 + $0x8] sm:$0xff] %v2637_v58 }
 0x4e4   : > { %3047 = shalt.err (!%p3044_p5)
}
 0x4e5   : > { %s3048_s8 = scalar_lea.hbm %s4787_s23, 256  ;;  %s3052_s13 = scalar_lea.hbm %s4840_s4, 512 }
 0x4e6   : > { %p3049_p10 = scmp.ne.s32.totalorder %s4787_s23, %s3048_s8  ;;  %p3053_p3 = scmp.lt.u32.totalorder %s4787_s23, %s4840_s4 }
 0x4e7   : > { %p3054_p7 = scmp.lt.u32.totalorder %s3052_s13, %s3048_s8  ;;  %p3056_p11 = scmp.lt.u32.totalorder %s3048_s8, %s4787_s23 }
 0x4e8   : > { %p3050_p13 = pnand %p3049_p10, %p3320_p2 }
 0x4e9   : > { %p3055_p12 = por %p3054_p7, %p3053_p3 }
 0x4ea   : > { %p3051_p9 = pneg %p3050_p13 }
 0x4eb   : > { %p3057_p1 = por %p3056_p11, %p3055_p12 }
 0x4ed   : > { %p3058_p4 = pnand %p3057_p1, %p3051_p9 }
 0x4ef   : > { %3061 = shalt.err (!%p3058_p4)
}
 0x4f0   : > { %2821 = dma.vmem_to_hbm [thread:$0]  (%p3320_p2), %s4789_s11, 256, %s4787_s23, %s2641_s18  }
 0x4f1 PF: > { %s2669_s7 = sand.u32 1, %s3104_s15   ;;  %p4948_p6 = scmp.ne.s32.totalorder %s4868_s26, 0 }
 0x4f2   : > { %p4949_p8 = scmp.ge.s32.totalorder %s3124_s20, 2  ;;  %s2670_s9 = scalar_lea.sflag [#allocation5], %s2669_s7 }
 0x4f4   : > { %p2838_p0 = pnand %p4949_p8, %p4948_p6 }
 0x4f6   : > { %3099 = dma.done.wait (!%p2838_p0), %s2670_s9, 256  }
 0x4f7   : > { %3101 = vsyncadd (!%p2838_p0), %s2670_s9, 4294967040  ;;  %s22_s20 = sadd.s32 1, %s3124_s20   ;;  %s4950_s15 = smov %s3108_s16 }
 0x4f8   : > { %p19_p5 = scmp.ge.s32.totalorder %s22_s20, 4   ;;  %s4951_s16 = smov %s3112_s17 }
 0x4f9   : > { %s4952_s17 = smov %s3332_s10  ;;  %s4953_s18 = smov %s3120_s19 }
 0x4fa   : > { %s4954_s19 = smov %s4956_s28  ;;  %21 = sbr.rel (!%p19_p5) target bundleno = 8 (0x8), region = 100 }
 0x501   :  { %2675 = vsyncpa [#allocation4], 1 }
 0x502   :  { %2677 = vsyncpa [#allocation4 + $0x1], 1 }
 0x503   :  { %2678 = vsyncpa [#allocation7], 1 }
 0x504   :  { %2679 = vsyncpa [#allocation10], 1 }
 0x505   :  { %2680 = vsyncpa [#allocation5], 1 }
 0x506   :  { %2682 = vsyncpa [#allocation5 + $0x1], 1 }

</bundles_post_ra>
